<compile_context>
chip_gen: v6e
topology: v6e:2x2x1
jax: 0.10.0
libtpu: 0.0.40
codegen_flags: <defaults>
</compile_context>

<pallas_src>
import functools
import math

import jax
import jax.numpy as jnp
import numpy as np
from jax.experimental import pallas as pl
from jax.experimental.pallas import tpu as pltpu

_EPS = 1e-5  # nn.InstanceNorm1d default eps


def _round_up(n, m):
    return ((n + m - 1) // m) * m


def _pad_axis(arr, axis, size):
    pad = size - arr.shape[axis]
    if pad <= 0:
        return arr
    widths = [(0, 0)] * arr.ndim
    widths[axis] = (0, pad)
    return jnp.pad(arr, widths)


def _instance_norm(h, w, b):
    # One-pass stats over L (biased variance + eps), matching
    # nn.InstanceNorm1d(affine=True); f32 throughout.
    mu = jnp.mean(h, axis=1, keepdims=True)
    m2 = jnp.mean(h * h, axis=1, keepdims=True)
    var = jnp.maximum(m2 - mu * mu, 0.0)
    return (h - mu) * jax.lax.rsqrt(var + _EPS) * w + b


def _decoder_kernel(dil_ref, x_ref,
                    in1w_ref, in1b_ref, w1t_ref, in2w_ref, in2b_ref,
                    wkt_ref, in3w_ref, in3b_ref, w2t_ref,
                    c1wt_ref, c1b_ref, c2wt_ref, c2b_ref,
                    out_ref, resid_ref, pad_ref, tap_ref,
                    *, k, num_classes, maxs, distinct_rs):
    TB, L, C2 = resid_ref.shape            # C2 = padded 2d
    CD = pad_ref.shape[-1]                 # padded d
    M = TB * L                             # folded matmul M dim
    blk = pl.program_id(1)
    nblk = pl.num_programs(1)
    r = dil_ref[blk]                       # dilation of this ResBlock (SMEM scalar)

    def mm(h2d, w):
        # (M, Cin) f32 x (Cin, Cout) bf16 -> bf16 MXU matmul, f32 accumulation.
        return jnp.dot(h2d.astype(jnp.bfloat16), w,
                       preferred_element_type=jnp.float32)

    # Per batch tile: load the residual into the persistent scratch and zero
    # the causal left-pad region (never overwritten afterwards).
    @pl.when(blk == 0)
    def _():
        resid_ref[...] = x_ref[...].astype(jnp.float32)
        pad_ref[:, :maxs, :] = jnp.zeros((TB, maxs, CD), jnp.bfloat16)

    x = resid_ref[...]                                               # (TB, L, C2) f32
    h = jnp.maximum(_instance_norm(x, in1w_ref[0], in1b_ref[0]), 0.0)
    h = mm(h.reshape(M, C2), w1t_ref[0]).reshape(TB, L, CD)          # conv1x1_1
    h = jnp.maximum(_instance_norm(h, in2w_ref[0], in2b_ref[0]), 0.0)
    hb = h.astype(jnp.bfloat16)

    # Dilated causal conv1xk (left zero pad r*(k-1), no bias): stage the k
    # causally-shifted taps side by side on the lane axis (bf16) and do a
    # single matmul with K = k*CD, so the k-way accumulation happens in the
    # MXU.  Shifts are static per pl.when(r == rv) branch.
    pad_ref[:, maxs:, :] = hb
    tap_ref[:, :, (k - 1) * CD:] = hb                                # s = 0 tap straight from h
    if k > 1:
        for rv in distinct_rs:
            def _stage(rv=rv):
                for j in range(k - 1):
                    s = (k - 1 - j) * rv
                    tap_ref[:, :, j * CD:(j + 1) * CD] = \
                        pad_ref[:, maxs - s:maxs - s + L, :]         # h[t - s], 0 for t < s
            pl.when(r == rv)(_stage)
    y = jnp.dot(tap_ref[...].reshape(M, k * CD), wkt_ref[0],
                preferred_element_type=jnp.float32).reshape(TB, L, CD)

    h = jnp.maximum(_instance_norm(y, in3w_ref[0], in3b_ref[0]), 0.0)
    resid_ref[...] = x + mm(h.reshape(M, CD), w2t_ref[0]).reshape(TB, L, C2)   # conv1x1_2 + residual

    # Head: conv1 (1x1, bias) -> relu -> conv2 (1x1, bias) -> log_softmax(channels).
    @pl.when(blk == nblk - 1)
    def _():
        xf = resid_ref[...].reshape(M, C2)
        hh = jnp.maximum(mm(xf, c1wt_ref[...]) + c1b_ref[...], 0.0)
        logits = mm(hh, c2wt_ref[...]) + c2b_ref[...]                # (M, NCP) f32
        if logits.shape[-1] > num_classes:
            lane = jax.lax.broadcasted_iota(jnp.int32, logits.shape, 1)
            logits = jnp.where(lane < num_classes, logits, jnp.float32(-1e30))
        mx = jnp.max(logits, axis=-1, keepdims=True)
        z = logits - mx
        lse = jnp.log(jnp.sum(jnp.exp(z), axis=-1, keepdims=True))
        out_ref[...] = (z - lse).reshape(TB, L, -1)


_PARAM_ORDER = ("in1w", "in1b", "w1t", "in2w", "in2b", "wkt",
                "in3w", "in3b", "w2t", "c1wt", "c1b", "c2wt", "c2b")
_PER_BLOCK = frozenset(("in1w", "in1b", "w1t", "in2w", "in2b", "wkt",
                        "in3w", "in3b", "w2t"))


def _choose_tb(B, L, target_m=512):
    # v5e/v6e are single-TC (the batch grid axis is a serial loop), so pick the
    # largest tb with M = tb*L near target_m to amortize MXU issue/drain, the
    # per-block InstanceNorm reductions and the ~0.35us/step grid overhead.
    tb = max(1, min(B, max(1, target_m // max(L, 1))))
    while B % tb:
        tb -= 1
    return tb


def _pad_params(params, C2P, CDP, NCP, k):
    f32, bf16 = jnp.float32, jnp.bfloat16
    p = {}
    p["in1w"] = _pad_axis(params["in1w"].astype(f32), 2, C2P)
    p["in1b"] = _pad_axis(params["in1b"].astype(f32), 2, C2P)
    p["w1t"] = _pad_axis(_pad_axis(params["w1t"], 1, C2P), 2, CDP).astype(bf16)
    p["in2w"] = _pad_axis(params["in2w"].astype(f32), 2, CDP)
    p["in2b"] = _pad_axis(params["in2b"].astype(f32), 2, CDP)
    wkt = _pad_axis(_pad_axis(params["wkt"], 2, CDP), 3, CDP).astype(bf16)
    p["wkt"] = wkt.reshape(wkt.shape[0], k * CDP, CDP)     # (NB, k*CDP, CDP) for the folded tap matmul
    p["in3w"] = _pad_axis(params["in3w"].astype(f32), 2, CDP)
    p["in3b"] = _pad_axis(params["in3b"].astype(f32), 2, CDP)
    p["w2t"] = _pad_axis(_pad_axis(params["w2t"], 1, CDP), 2, C2P).astype(bf16)
    p["c1wt"] = _pad_axis(_pad_axis(params["c1wt"], 0, C2P), 1, C2P).astype(bf16)
    p["c1b"] = _pad_axis(params["c1b"].astype(f32), 1, C2P)
    p["c2wt"] = _pad_axis(_pad_axis(params["c2wt"], 0, C2P), 1, NCP).astype(bf16)
    p["c2b"] = _pad_axis(params["c2b"].astype(f32), 1, NCP)
    return p


@functools.partial(jax.jit, static_argnames=("dilations", "k"))
def bytenet_decoder_pallas_nlc(x_nlc, params, *, dilations, k):
    # x_nlc: (B, L, 2d) -> (B, L, num_classes) log-probs.
    B, L, C2 = x_nlc.shape
    d = params["w1t"].shape[-1]
    nc = params["c2b"].shape[-1]
    NB = len(dilations)

    C2P = _round_up(C2, 128)
    CDP = _round_up(d, 128)
    NCP = _round_up(nc, 128)
    MAXS = _round_up(max((k - 1) * max(dilations), 1), 8)

    xp = _pad_axis(x_nlc, 2, C2P).astype(jnp.bfloat16)
    pp = _pad_params(params, C2P, CDP, NCP, k)
    dil = jnp.asarray(dilations, dtype=jnp.int32)

    tb = _choose_tb(B, L)
    grid = (B // tb, NB)                     # ResBlock axis innermost, "arbitrary"

    in_specs = [pl.BlockSpec((tb, L, C2P), lambda b, blk, dref: (b, 0, 0))]
    args = [xp]
    for name in _PARAM_ORDER:
        arr = pp[name]
        nd = arr.ndim
        if name in _PER_BLOCK:
            spec = pl.BlockSpec((1,) + arr.shape[1:],
                                lambda b, blk, dref, _nd=nd: (blk,) + (0,) * (_nd - 1))
        else:
            spec = pl.BlockSpec(arr.shape,
                                lambda b, blk, dref, _nd=nd: (0,) * _nd)
        in_specs.append(spec)
        args.append(arr)

    # Explicit scoped-VMEM budget: tiles + double-buffered per-block weights +
    # head weights + in-flight f32 temporaries, with headroom.
    def _nbytes(a, skip=0):
        return int(np.prod(a.shape[skip:])) * a.dtype.itemsize

    per_block_w = sum(_nbytes(pp[n], 1) for n in _PER_BLOCK)
    head_w = sum(_nbytes(pp[n]) for n in _PARAM_ORDER if n not in _PER_BLOCK)
    scratch_b = tb * L * C2P * 4 + tb * (MAXS + L) * CDP * 2 + tb * L * k * CDP * 2
    io_b = 2 * tb * L * C2P * 2 + 2 * tb * L * NCP * 4
    live_b = 8 * tb * L * max(C2P, k * CDP) * 4
    vmem_limit = int(min(max(1.25 * (2 * per_block_w + 2 * head_w
                                     + scratch_b + io_b + live_b),
                             32 << 20), 100 << 20))

    kernel = functools.partial(_decoder_kernel, k=k, num_classes=nc, maxs=MAXS,
                               distinct_rs=tuple(sorted(set(dilations))))
    out_padded = pl.pallas_call(
        kernel,
        out_shape=jax.ShapeDtypeStruct((B, L, NCP), jnp.float32),
        grid_spec=pltpu.PrefetchScalarGridSpec(
            num_scalar_prefetch=1,
            grid=grid,
            in_specs=in_specs,
            out_specs=pl.BlockSpec((tb, L, NCP), lambda b, blk, dref: (b, 0, 0)),
            scratch_shapes=[
                pltpu.VMEM((tb, L, C2P), jnp.float32),          # residual track
                pltpu.VMEM((tb, MAXS + L, CDP), jnp.bfloat16),  # causal-padded h
                pltpu.VMEM((tb, L, k * CDP), jnp.bfloat16),     # staged taps (folded conv)
            ],
        ),
        compiler_params=pltpu.CompilerParams(
            dimension_semantics=("parallel", "arbitrary"),
            vmem_limit_bytes=vmem_limit),
    )(dil, *args)
    return out_padded[:, :, :nc]


def bytenet_decoder_pallas(x_ncl, params, dilations, k):
    # PyTorch-style NCL boundary: (B, 2d, L) in -> (B, num_classes, L) out.
    out_nlc = bytenet_decoder_pallas_nlc(
        jnp.transpose(x_ncl, (0, 2, 1)), params, dilations=tuple(dilations), k=k)
    return jnp.transpose(out_nlc, (0, 2, 1))


def bytenet_decoder_reference(x_ncl, params, dilations, k):
    # Pure-JAX/XLA reference with the same bf16-input / bf16-matmul /
    # f32-accumulate recipe as the kernel (two-pass InstanceNorm stats).
    x = jnp.transpose(x_ncl, (0, 2, 1)).astype(jnp.bfloat16).astype(jnp.float32)
    L = x.shape[1]

    def inorm(h, w, b):
        mu = jnp.mean(h, axis=1, keepdims=True)
        var = jnp.mean((h - mu) ** 2, axis=1, keepdims=True)
        return (h - mu) * jax.lax.rsqrt(var + _EPS) * w + b

    def mm(h, w):
        return jnp.einsum("blc,cd->bld", h.astype(jnp.bfloat16),
                          w.astype(jnp.bfloat16),
                          preferred_element_type=jnp.float32)

    for blk, r in enumerate(dilations):
        h = jax.nn.relu(inorm(x, params["in1w"][blk], params["in1b"][blk]))
        h = mm(h, params["w1t"][blk])
        h = jax.nn.relu(inorm(h, params["in2w"][blk], params["in2b"][blk]))
        y = jnp.zeros_like(h)
        for j in range(k):
            s = (k - 1 - j) * r
            hs = jnp.pad(h, ((0, 0), (s, 0), (0, 0)))[:, :L, :]
            y = y + mm(hs, params["wkt"][blk, j])
        h = jax.nn.relu(inorm(y, params["in3w"][blk], params["in3b"][blk]))
        x = x + mm(h, params["w2t"][blk])
    h = jax.nn.relu(mm(x, params["c1wt"]) + params["c1b"])
    logits = mm(h, params["c2wt"]) + params["c2b"]
    out = jax.nn.log_softmax(logits, axis=-1)
    return jnp.transpose(out, (0, 2, 1))


def init_params(key, d, k, num_blocks, num_classes):
    ks = jax.random.split(key, 13)
    n = lambda kk, shape, scale: (scale * jax.random.normal(kk, shape)).astype(jnp.float32)
    # PyTorch conv weight layouts, pre-transposed for the NLC kernel (logical,
    # unpadded, f32 — the wrapper pads channels to 128 and casts to bf16).
    w1 = n(ks[0], (num_blocks, d, 2 * d), 1.0 / math.sqrt(2 * d))      # conv1x1_1 (out=d, in=2d)
    wk = n(ks[1], (num_blocks, d, d, k), 1.0 / math.sqrt(d * k))        # maskedconv1xk (out, in, k)
    w2 = n(ks[2], (num_blocks, 2 * d, d), 1.0 / math.sqrt(d))           # conv1x1_2 (out=2d, in=d)
    c1w = n(ks[3], (2 * d, 2 * d), 1.0 / math.sqrt(2 * d))              # conv1 (bias=True)
    c2w = n(ks[4], (num_classes, 2 * d), 1.0 / math.sqrt(2 * d))        # conv2 (bias=True)
    return {
        "in1w": 1.0 + n(ks[5], (num_blocks, 1, 2 * d), 0.1),
        "in1b": n(ks[6], (num_blocks, 1, 2 * d), 0.1),
        "w1t": jnp.transpose(w1, (0, 2, 1)),              # (NB, 2d, d)
        "in2w": 1.0 + n(ks[7], (num_blocks, 1, d), 0.1),
        "in2b": n(ks[8], (num_blocks, 1, d), 0.1),
        "wkt": jnp.transpose(wk, (0, 3, 2, 1)),           # (NB, k, d_in, d_out)
        "in3w": 1.0 + n(ks[9], (num_blocks, 1, d), 0.1),
        "in3b": n(ks[10], (num_blocks, 1, d), 0.1),
        "w2t": jnp.transpose(w2, (0, 2, 1)),              # (NB, d, 2d)
        "c1wt": jnp.transpose(c1w),                       # (2d, 2d)
        "c1b": n(ks[11], (1, 2 * d), 0.1),
        "c2wt": jnp.transpose(c2w),                       # (2d, num_classes)
        "c2b": n(ks[12], (1, num_classes), 0.1),
    }


if __name__ == "__main__":
    # small shapes consistent with BytenetDecoder(d, max_r, k, num_sets, num_classes)
    B, d, L = 4, 8, 16
    k, max_r, num_sets, num_classes = 3, 4, 2, 10
    rlist = [1 << x for x in range(15) if (1 << x) <= max_r]   # [1, 2, 4]
    dilations = tuple(rlist * num_sets)                        # 6 causal ResBlocks

    key = jax.random.PRNGKey(0)
    pkey, xkey = jax.random.split(key)
    params = init_params(pkey, d, k, len(dilations), num_classes)
    x = jax.random.normal(xkey, (B, 2 * d, L), jnp.float32)    # NCL, like PyTorch input

    out = jax.block_until_ready(bytenet_decoder_pallas(x, params, dilations, k))
    ref = bytenet_decoder_reference(x, params, dilations, k)
    assert out.shape == (B, num_classes, L), out.shape
    np.testing.assert_allclose(np.asarray(out), np.asarray(ref), rtol=2e-2, atol=2e-2)
    print("KERNEL_OK")
</pallas_src>

<mosaic_0001>
module attributes {stable_mosaic.version = 11 : i64} {
  func.func @_decoder_kernel(%arg0: i32, %arg1: i32, %arg2: memref<6xi32, #tpu.memory_space<smem>>, %arg3: memref<4x16x128xbf16, #tpu.memory_space<vmem>>, %arg4: memref<1x1x128xf32, #tpu.memory_space<vmem>>, %arg5: memref<1x1x128xf32, #tpu.memory_space<vmem>>, %arg6: memref<1x128x128xbf16, #tpu.memory_space<vmem>>, %arg7: memref<1x1x128xf32, #tpu.memory_space<vmem>>, %arg8: memref<1x1x128xf32, #tpu.memory_space<vmem>>, %arg9: memref<1x384x128xbf16, #tpu.memory_space<vmem>>, %arg10: memref<1x1x128xf32, #tpu.memory_space<vmem>>, %arg11: memref<1x1x128xf32, #tpu.memory_space<vmem>>, %arg12: memref<1x128x128xbf16, #tpu.memory_space<vmem>>, %arg13: memref<128x128xbf16, #tpu.memory_space<vmem>>, %arg14: memref<1x128xf32, #tpu.memory_space<vmem>>, %arg15: memref<128x128xbf16, #tpu.memory_space<vmem>>, %arg16: memref<1x128xf32, #tpu.memory_space<vmem>>, %arg17: memref<4x16x128xf32, #tpu.memory_space<vmem>>, %arg18: memref<4x16x128xf32, #tpu.memory_space<vmem>>, %arg19: memref<4x24x128xbf16, #tpu.memory_space<vmem>>, %arg20: memref<4x16x384xbf16, #tpu.memory_space<vmem>>) attributes {dimension_semantics = [#tpu.dimension_semantics<parallel>, #tpu.dimension_semantics<arbitrary>], iteration_bounds = array<i64: 1, 6>, scalar_prefetch = 1 : i64, scratch_operands = 3 : i64, tpu.core_type = #tpu.core_type<tc>, window_params = [{transform_indices = @transform_0, window_bounds = array<i64: 4, 16, 128>}, {transform_indices = @transform_1, window_bounds = array<i64: 1, 1, 128>}, {transform_indices = @transform_2, window_bounds = array<i64: 1, 1, 128>}, {transform_indices = @transform_3, window_bounds = array<i64: 1, 128, 128>}, {transform_indices = @transform_4, window_bounds = array<i64: 1, 1, 128>}, {transform_indices = @transform_5, window_bounds = array<i64: 1, 1, 128>}, {transform_indices = @transform_6, window_bounds = array<i64: 1, 384, 128>}, {transform_indices = @transform_7, window_bounds = array<i64: 1, 1, 128>}, {transform_indices = @transform_8, window_bounds = array<i64: 1, 1, 128>}, {transform_indices = @transform_9, window_bounds = array<i64: 1, 128, 128>}, {pipeline_mode = #tpu.pipeline_mode<synchronous>, transform_indices = @transform_10, window_bounds = array<i64: 128, 128>}, {pipeline_mode = #tpu.pipeline_mode<synchronous>, transform_indices = @transform_11, window_bounds = array<i64: 1, 128>}, {pipeline_mode = #tpu.pipeline_mode<synchronous>, transform_indices = @transform_12, window_bounds = array<i64: 128, 128>}, {pipeline_mode = #tpu.pipeline_mode<synchronous>, transform_indices = @transform_13, window_bounds = array<i64: 1, 128>}, {transform_indices = @transform_14, window_bounds = array<i64: 4, 16, 128>}]} {
    %0 = arith.index_cast %arg1 : i32 to index
    %1 = memref.load %arg2[%0] : memref<6xi32, #tpu.memory_space<smem>>
    %c0_i32 = arith.constant 0 : i32
    %2 = arith.cmpi eq, %arg1, %c0_i32 : i32
    %3 = arith.extui %2 : i1 to i32
    %c0_i32_0 = arith.constant 0 : i32
    %4 = arith.cmpi ne, %3, %c0_i32_0 : i32
    scf.if %4 {
      %c0_67 = arith.constant 0 : index
      %c0_68 = arith.constant 0 : index
      %c0_69 = arith.constant 0 : index
      %137 = vector.load %arg3[%c0_67, %c0_68, %c0_69] : memref<4x16x128xbf16, #tpu.memory_space<vmem>>, vector<4x16x128xbf16>
      %138 = arith.extf %137 : vector<4x16x128xbf16> to vector<4x16x128xf32>
      %c0_70 = arith.constant 0 : index
      %c0_71 = arith.constant 0 : index
      %c0_72 = arith.constant 0 : index
      %139 = vector.load %arg18[%c0_70, %c0_71, %c0_72] : memref<4x16x128xf32, #tpu.memory_space<vmem>>, vector<4x16x128xf32>
      tpu.vector_store %arg18[%c0_70, %c0_71, %c0_72], %138 {strides = array<i32>} : memref<4x16x128xf32, #tpu.memory_space<vmem>>, vector<4x16x128xf32>,
      %cst_73 = arith.constant 0.000000e+00 : bf16
      %140 = vector.broadcast %cst_73 : bf16 to vector<4x8x128xbf16>
      %c0_74 = arith.constant 0 : index
      %c0_75 = arith.constant 0 : index
      %c0_76 = arith.constant 0 : index
      %141 = vector.load %arg19[%c0_74, %c0_75, %c0_76] : memref<4x24x128xbf16, #tpu.memory_space<vmem>>, vector<4x8x128xbf16>
      tpu.vector_store %arg19[%c0_74, %c0_75, %c0_76], %140 {strides = array<i32>} : memref<4x24x128xbf16, #tpu.memory_space<vmem>>, vector<4x8x128xbf16>,
    } else {
    }
    %c0 = arith.constant 0 : index
    %c0_1 = arith.constant 0 : index
    %c0_2 = arith.constant 0 : index
    %5 = vector.load %arg18[%c0, %c0_1, %c0_2] : memref<4x16x128xf32, #tpu.memory_space<vmem>>, vector<4x16x128xf32>
    %c0_3 = arith.constant 0 : index
    %c0_4 = arith.constant 0 : index
    %c0_5 = arith.constant 0 : index
    %6 = vector.load %arg4[%c0_3, %c0_4, %c0_5] : memref<1x1x128xf32, #tpu.memory_space<vmem>>, vector<1x1x128xf32>
    %7 = vector.shape_cast %6 : vector<1x1x128xf32> to vector<1x128xf32>
    %c0_6 = arith.constant 0 : index
    %c0_7 = arith.constant 0 : index
    %c0_8 = arith.constant 0 : index
    %8 = vector.load %arg5[%c0_6, %c0_7, %c0_8] : memref<1x1x128xf32, #tpu.memory_space<vmem>>, vector<1x1x128xf32>
    %9 = vector.shape_cast %8 : vector<1x1x128xf32> to vector<1x128xf32>
    %cst = arith.constant dense<0.000000e+00> : vector<4x128xf32>
    %10 = vector.multi_reduction <add>, %5, %cst [1] : vector<4x16x128xf32> to vector<4x128xf32>
    %11 = vector.shape_cast %10 : vector<4x128xf32> to vector<4x1x128xf32>
    %cst_9 = arith.constant 1.600000e+01 : f32
    %12 = vector.broadcast %cst_9 : f32 to vector<4x1x128xf32>
    %13 = arith.divf %11, %12 : vector<4x1x128xf32>
    %14 = arith.mulf %5, %5 : vector<4x16x128xf32>
    %cst_10 = arith.constant dense<0.000000e+00> : vector<4x128xf32>
    %15 = vector.multi_reduction <add>, %14, %cst_10 [1] : vector<4x16x128xf32> to vector<4x128xf32>
    %16 = vector.shape_cast %15 : vector<4x128xf32> to vector<4x1x128xf32>
    %cst_11 = arith.constant 1.600000e+01 : f32
    %17 = vector.broadcast %cst_11 : f32 to vector<4x1x128xf32>
    %18 = arith.divf %16, %17 : vector<4x1x128xf32>
    %19 = arith.mulf %13, %13 : vector<4x1x128xf32>
    %20 = arith.subf %18, %19 : vector<4x1x128xf32>
    %cst_12 = arith.constant 0.000000e+00 : f32
    %21 = vector.broadcast %cst_12 : f32 to vector<4x1x128xf32>
    %22 = arith.maximumf %20, %21 : vector<4x1x128xf32>
    %23 = vector.broadcast %13 : vector<4x1x128xf32> to vector<4x16x128xf32>
    %24 = arith.subf %5, %23 : vector<4x16x128xf32>
    %cst_13 = arith.constant 9.99999974E-6 : f32
    %25 = vector.broadcast %cst_13 : f32 to vector<4x1x128xf32>
    %26 = arith.addf %22, %25 : vector<4x1x128xf32>
    %27 = math.rsqrt %26 : vector<4x1x128xf32>
    %28 = vector.broadcast %27 : vector<4x1x128xf32> to vector<4x16x128xf32>
    %29 = arith.mulf %24, %28 : vector<4x16x128xf32>
    %30 = vector.shape_cast %7 : vector<1x128xf32> to vector<1x1x128xf32>
    %31 = vector.broadcast %30 : vector<1x1x128xf32> to vector<4x16x128xf32>
    %32 = arith.mulf %29, %31 : vector<4x16x128xf32>
    %33 = vector.shape_cast %9 : vector<1x128xf32> to vector<1x1x128xf32>
    %34 = vector.broadcast %33 : vector<1x1x128xf32> to vector<4x16x128xf32>
    %35 = arith.addf %32, %34 : vector<4x16x128xf32>
    %cst_14 = arith.constant 0.000000e+00 : f32
    %36 = vector.broadcast %cst_14 : f32 to vector<4x16x128xf32>
    %37 = arith.maximumf %35, %36 : vector<4x16x128xf32>
    %38 = vector.shape_cast %37 : vector<4x16x128xf32> to vector<64x128xf32>
    %c0_15 = arith.constant 0 : index
    %c0_16 = arith.constant 0 : index
    %c0_17 = arith.constant 0 : index
    %39 = vector.load %arg6[%c0_15, %c0_16, %c0_17] : memref<1x128x128xbf16, #tpu.memory_space<vmem>>, vector<1x128x128xbf16>
    %40 = vector.shape_cast %39 : vector<1x128x128xbf16> to vector<128x128xbf16>
    %41 = arith.truncf %38 : vector<64x128xf32> to vector<64x128xbf16>
    %cst_18 = arith.constant dense<0.000000e+00> : vector<64x128xf32>
    %42 = tpu.matmul %41, %40, %cst_18 {dimension_numbers = #tpu.dot_dimension_numbers<[1], [0], [0], [1], [0, 0, 1, 1], [], []>} : vector<64x128xbf16>, vector<128x128xbf16>, vector<64x128xf32> -> vector<64x128xf32>
    %43 = vector.shape_cast %42 : vector<64x128xf32> to vector<4x16x128xf32>
    %c0_19 = arith.constant 0 : index
    %c0_20 = arith.constant 0 : index
    %c0_21 = arith.constant 0 : index
    %44 = vector.load %arg7[%c0_19, %c0_20, %c0_21] : memref<1x1x128xf32, #tpu.memory_space<vmem>>, vector<1x1x128xf32>
    %45 = vector.shape_cast %44 : vector<1x1x128xf32> to vector<1x128xf32>
    %c0_22 = arith.constant 0 : index
    %c0_23 = arith.constant 0 : index
    %c0_24 = arith.constant 0 : index
    %46 = vector.load %arg8[%c0_22, %c0_23, %c0_24] : memref<1x1x128xf32, #tpu.memory_space<vmem>>, vector<1x1x128xf32>
    %47 = vector.shape_cast %46 : vector<1x1x128xf32> to vector<1x128xf32>
    %cst_25 = arith.constant dense<0.000000e+00> : vector<4x128xf32>
    %48 = vector.multi_reduction <add>, %43, %cst_25 [1] : vector<4x16x128xf32> to vector<4x128xf32>
    %49 = vector.shape_cast %48 : vector<4x128xf32> to vector<4x1x128xf32>
    %cst_26 = arith.constant 1.600000e+01 : f32
    %50 = vector.broadcast %cst_26 : f32 to vector<4x1x128xf32>
    %51 = arith.divf %49, %50 : vector<4x1x128xf32>
    %52 = arith.mulf %43, %43 : vector<4x16x128xf32>
    %cst_27 = arith.constant dense<0.000000e+00> : vector<4x128xf32>
    %53 = vector.multi_reduction <add>, %52, %cst_27 [1] : vector<4x16x128xf32> to vector<4x128xf32>
    %54 = vector.shape_cast %53 : vector<4x128xf32> to vector<4x1x128xf32>
    %cst_28 = arith.constant 1.600000e+01 : f32
    %55 = vector.broadcast %cst_28 : f32 to vector<4x1x128xf32>
    %56 = arith.divf %54, %55 : vector<4x1x128xf32>
    %57 = arith.mulf %51, %51 : vector<4x1x128xf32>
    %58 = arith.subf %56, %57 : vector<4x1x128xf32>
    %cst_29 = arith.constant 0.000000e+00 : f32
    %59 = vector.broadcast %cst_29 : f32 to vector<4x1x128xf32>
    %60 = arith.maximumf %58, %59 : vector<4x1x128xf32>
    %61 = vector.broadcast %51 : vector<4x1x128xf32> to vector<4x16x128xf32>
    %62 = arith.subf %43, %61 : vector<4x16x128xf32>
    %cst_30 = arith.constant 9.99999974E-6 : f32
    %63 = vector.broadcast %cst_30 : f32 to vector<4x1x128xf32>
    %64 = arith.addf %60, %63 : vector<4x1x128xf32>
    %65 = math.rsqrt %64 : vector<4x1x128xf32>
    %66 = vector.broadcast %65 : vector<4x1x128xf32> to vector<4x16x128xf32>
    %67 = arith.mulf %62, %66 : vector<4x16x128xf32>
    %68 = vector.shape_cast %45 : vector<1x128xf32> to vector<1x1x128xf32>
    %69 = vector.broadcast %68 : vector<1x1x128xf32> to vector<4x16x128xf32>
    %70 = arith.mulf %67, %69 : vector<4x16x128xf32>
    %71 = vector.shape_cast %47 : vector<1x128xf32> to vector<1x1x128xf32>
    %72 = vector.broadcast %71 : vector<1x1x128xf32> to vector<4x16x128xf32>
    %73 = arith.addf %70, %72 : vector<4x16x128xf32>
    %cst_31 = arith.constant 0.000000e+00 : f32
    %74 = vector.broadcast %cst_31 : f32 to vector<4x16x128xf32>
    %75 = arith.maximumf %73, %74 : vector<4x16x128xf32>
    %76 = arith.truncf %75 : vector<4x16x128xf32> to vector<4x16x128xbf16>
    %c0_32 = arith.constant 0 : index
    %c8 = arith.constant 8 : index
    %c0_33 = arith.constant 0 : index
    %77 = vector.load %arg19[%c0_32, %c8, %c0_33] : memref<4x24x128xbf16, #tpu.memory_space<vmem>>, vector<4x16x128xbf16>
    tpu.vector_store %arg19[%c0_32, %c8, %c0_33], %76 {strides = array<i32>} : memref<4x24x128xbf16, #tpu.memory_space<vmem>>, vector<4x16x128xbf16>,
    %c0_34 = arith.constant 0 : index
    %c0_35 = arith.constant 0 : index
    %c256 = arith.constant 256 : index
    %78 = vector.load %arg20[%c0_34, %c0_35, %c256] : memref<4x16x384xbf16, #tpu.memory_space<vmem>>, vector<4x16x128xbf16>
    tpu.vector_store %arg20[%c0_34, %c0_35, %c256], %76 {strides = array<i32>} : memref<4x16x384xbf16, #tpu.memory_space<vmem>>, vector<4x16x128xbf16>,
    %c1_i32 = arith.constant 1 : i32
    %79 = arith.cmpi eq, %1, %c1_i32 : i32
    %80 = arith.extui %79 : i1 to i32
    %c0_i32_36 = arith.constant 0 : i32
    %81 = arith.cmpi ne, %80, %c0_i32_36 : i32
    scf.if %81 {
      %c0_67 = arith.constant 0 : index
      %c6 = arith.constant 6 : index
      %c0_68 = arith.constant 0 : index
      %137 = vector.load %arg19[%c0_67, %c6, %c0_68] : memref<4x24x128xbf16, #tpu.memory_space<vmem>>, vector<4x16x128xbf16>
      %c0_69 = arith.constant 0 : index
      %c0_70 = arith.constant 0 : index
      %c0_71 = arith.constant 0 : index
      %138 = vector.load %arg20[%c0_69, %c0_70, %c0_71] : memref<4x16x384xbf16, #tpu.memory_space<vmem>>, vector<4x16x128xbf16>
      tpu.vector_store %arg20[%c0_69, %c0_70, %c0_71], %137 {strides = array<i32>} : memref<4x16x384xbf16, #tpu.memory_space<vmem>>, vector<4x16x128xbf16>,
      %c0_72 = arith.constant 0 : index
      %c7 = arith.constant 7 : index
      %c0_73 = arith.constant 0 : index
      %139 = vector.load %arg19[%c0_72, %c7, %c0_73] : memref<4x24x128xbf16, #tpu.memory_space<vmem>>, vector<4x16x128xbf16>
      %c0_74 = arith.constant 0 : index
      %c0_75 = arith.constant 0 : index
      %c128 = arith.constant 128 : index
      %140 = vector.load %arg20[%c0_74, %c0_75, %c128] : memref<4x16x384xbf16, #tpu.memory_space<vmem>>, vector<4x16x128xbf16>
      tpu.vector_store %arg20[%c0_74, %c0_75, %c128], %139 {strides = array<i32>} : memref<4x16x384xbf16, #tpu.memory_space<vmem>>, vector<4x16x128xbf16>,
    } else {
    }
    %c2_i32 = arith.constant 2 : i32
    %82 = arith.cmpi eq, %1, %c2_i32 : i32
    %83 = arith.extui %82 : i1 to i32
    %c0_i32_37 = arith.constant 0 : i32
    %84 = arith.cmpi ne, %83, %c0_i32_37 : i32
    scf.if %84 {
      %c0_67 = arith.constant 0 : index
      %c4 = arith.constant 4 : index
      %c0_68 = arith.constant 0 : index
      %137 = vector.load %arg19[%c0_67, %c4, %c0_68] : memref<4x24x128xbf16, #tpu.memory_space<vmem>>, vector<4x16x128xbf16>
      %c0_69 = arith.constant 0 : index
      %c0_70 = arith.constant 0 : index
      %c0_71 = arith.constant 0 : index
      %138 = vector.load %arg20[%c0_69, %c0_70, %c0_71] : memref<4x16x384xbf16, #tpu.memory_space<vmem>>, vector<4x16x128xbf16>
      tpu.vector_store %arg20[%c0_69, %c0_70, %c0_71], %137 {strides = array<i32>} : memref<4x16x384xbf16, #tpu.memory_space<vmem>>, vector<4x16x128xbf16>,
      %c0_72 = arith.constant 0 : index
      %c6 = arith.constant 6 : index
      %c0_73 = arith.constant 0 : index
      %139 = vector.load %arg19[%c0_72, %c6, %c0_73] : memref<4x24x128xbf16, #tpu.memory_space<vmem>>, vector<4x16x128xbf16>
      %c0_74 = arith.constant 0 : index
      %c0_75 = arith.constant 0 : index
      %c128 = arith.constant 128 : index
      %140 = vector.load %arg20[%c0_74, %c0_75, %c128] : memref<4x16x384xbf16, #tpu.memory_space<vmem>>, vector<4x16x128xbf16>
      tpu.vector_store %arg20[%c0_74, %c0_75, %c128], %139 {strides = array<i32>} : memref<4x16x384xbf16, #tpu.memory_space<vmem>>, vector<4x16x128xbf16>,
    } else {
    }
    %c4_i32 = arith.constant 4 : i32
    %85 = arith.cmpi eq, %1, %c4_i32 : i32
    %86 = arith.extui %85 : i1 to i32
    %c0_i32_38 = arith.constant 0 : i32
    %87 = arith.cmpi ne, %86, %c0_i32_38 : i32
    scf.if %87 {
      %c0_67 = arith.constant 0 : index
      %c0_68 = arith.constant 0 : index
      %c0_69 = arith.constant 0 : index
      %137 = vector.load %arg19[%c0_67, %c0_68, %c0_69] : memref<4x24x128xbf16, #tpu.memory_space<vmem>>, vector<4x16x128xbf16>
      %c0_70 = arith.constant 0 : index
      %c0_71 = arith.constant 0 : index
      %c0_72 = arith.constant 0 : index
      %138 = vector.load %arg20[%c0_70, %c0_71, %c0_72] : memref<4x16x384xbf16, #tpu.memory_space<vmem>>, vector<4x16x128xbf16>
      tpu.vector_store %arg20[%c0_70, %c0_71, %c0_72], %137 {strides = array<i32>} : memref<4x16x384xbf16, #tpu.memory_space<vmem>>, vector<4x16x128xbf16>,
      %c0_73 = arith.constant 0 : index
      %c4 = arith.constant 4 : index
      %c0_74 = arith.constant 0 : index
      %139 = vector.load %arg19[%c0_73, %c4, %c0_74] : memref<4x24x128xbf16, #tpu.memory_space<vmem>>, vector<4x16x128xbf16>
      %c0_75 = arith.constant 0 : index
      %c0_76 = arith.constant 0 : index
      %c128 = arith.constant 128 : index
      %140 = vector.load %arg20[%c0_75, %c0_76, %c128] : memref<4x16x384xbf16, #tpu.memory_space<vmem>>, vector<4x16x128xbf16>
      tpu.vector_store %arg20[%c0_75, %c0_76, %c128], %139 {strides = array<i32>} : memref<4x16x384xbf16, #tpu.memory_space<vmem>>, vector<4x16x128xbf16>,
    } else {
    }
    %c0_39 = arith.constant 0 : index
    %c0_40 = arith.constant 0 : index
    %c0_41 = arith.constant 0 : index
    %88 = vector.load %arg20[%c0_39, %c0_40, %c0_41] : memref<4x16x384xbf16, #tpu.memory_space<vmem>>, vector<4x16x384xbf16>
    %89 = vector.shape_cast %88 : vector<4x16x384xbf16> to vector<64x384xbf16>
    %c0_42 = arith.constant 0 : index
    %c0_43 = arith.constant 0 : index
    %c0_44 = arith.constant 0 : index
    %90 = vector.load %arg9[%c0_42, %c0_43, %c0_44] : memref<1x384x128xbf16, #tpu.memory_space<vmem>>, vector<1x384x128xbf16>
    %91 = vector.shape_cast %90 : vector<1x384x128xbf16> to vector<384x128xbf16>
    %cst_45 = arith.constant dense<0.000000e+00> : vector<64x128xf32>
    %92 = tpu.matmul %89, %91, %cst_45 {dimension_numbers = #tpu.dot_dimension_numbers<[1], [0], [0], [1], [0, 0, 1, 1], [], []>} : vector<64x384xbf16>, vector<384x128xbf16>, vector<64x128xf32> -> vector<64x128xf32>
    %93 = vector.shape_cast %92 : vector<64x128xf32> to vector<4x16x128xf32>
    %c0_46 = arith.constant 0 : index
    %c0_47 = arith.constant 0 : index
    %c0_48 = arith.constant 0 : index
    %94 = vector.load %arg10[%c0_46, %c0_47, %c0_48] : memref<1x1x128xf32, #tpu.memory_space<vmem>>, vector<1x1x128xf32>
    %95 = vector.shape_cast %94 : vector<1x1x128xf32> to vector<1x128xf32>
    %c0_49 = arith.constant 0 : index
    %c0_50 = arith.constant 0 : index
    %c0_51 = arith.constant 0 : index
    %96 = vector.load %arg11[%c0_49, %c0_50, %c0_51] : memref<1x1x128xf32, #tpu.memory_space<vmem>>, vector<1x1x128xf32>
    %97 = vector.shape_cast %96 : vector<1x1x128xf32> to vector<1x128xf32>
    %cst_52 = arith.constant dense<0.000000e+00> : vector<4x128xf32>
    %98 = vector.multi_reduction <add>, %93, %cst_52 [1] : vector<4x16x128xf32> to vector<4x128xf32>
    %99 = vector.shape_cast %98 : vector<4x128xf32> to vector<4x1x128xf32>
    %cst_53 = arith.constant 1.600000e+01 : f32
    %100 = vector.broadcast %cst_53 : f32 to vector<4x1x128xf32>
    %101 = arith.divf %99, %100 : vector<4x1x128xf32>
    %102 = arith.mulf %93, %93 : vector<4x16x128xf32>
    %cst_54 = arith.constant dense<0.000000e+00> : vector<4x128xf32>
    %103 = vector.multi_reduction <add>, %102, %cst_54 [1] : vector<4x16x128xf32> to vector<4x128xf32>
    %104 = vector.shape_cast %103 : vector<4x128xf32> to vector<4x1x128xf32>
    %cst_55 = arith.constant 1.600000e+01 : f32
    %105 = vector.broadcast %cst_55 : f32 to vector<4x1x128xf32>
    %106 = arith.divf %104, %105 : vector<4x1x128xf32>
    %107 = arith.mulf %101, %101 : vector<4x1x128xf32>
    %108 = arith.subf %106, %107 : vector<4x1x128xf32>
    %cst_56 = arith.constant 0.000000e+00 : f32
    %109 = vector.broadcast %cst_56 : f32 to vector<4x1x128xf32>
    %110 = arith.maximumf %108, %109 : vector<4x1x128xf32>
    %111 = vector.broadcast %101 : vector<4x1x128xf32> to vector<4x16x128xf32>
    %112 = arith.subf %93, %111 : vector<4x16x128xf32>
    %cst_57 = arith.constant 9.99999974E-6 : f32
    %113 = vector.broadcast %cst_57 : f32 to vector<4x1x128xf32>
    %114 = arith.addf %110, %113 : vector<4x1x128xf32>
    %115 = math.rsqrt %114 : vector<4x1x128xf32>
    %116 = vector.broadcast %115 : vector<4x1x128xf32> to vector<4x16x128xf32>
    %117 = arith.mulf %112, %116 : vector<4x16x128xf32>
    %118 = vector.shape_cast %95 : vector<1x128xf32> to vector<1x1x128xf32>
    %119 = vector.broadcast %118 : vector<1x1x128xf32> to vector<4x16x128xf32>
    %120 = arith.mulf %117, %119 : vector<4x16x128xf32>
    %121 = vector.shape_cast %97 : vector<1x128xf32> to vector<1x1x128xf32>
    %122 = vector.broadcast %121 : vector<1x1x128xf32> to vector<4x16x128xf32>
    %123 = arith.addf %120, %122 : vector<4x16x128xf32>
    %cst_58 = arith.constant 0.000000e+00 : f32
    %124 = vector.broadcast %cst_58 : f32 to vector<4x16x128xf32>
    %125 = arith.maximumf %123, %124 : vector<4x16x128xf32>
    %126 = vector.shape_cast %125 : vector<4x16x128xf32> to vector<64x128xf32>
    %c0_59 = arith.constant 0 : index
    %c0_60 = arith.constant 0 : index
    %c0_61 = arith.constant 0 : index
    %127 = vector.load %arg12[%c0_59, %c0_60, %c0_61] : memref<1x128x128xbf16, #tpu.memory_space<vmem>>, vector<1x128x128xbf16>
    %128 = vector.shape_cast %127 : vector<1x128x128xbf16> to vector<128x128xbf16>
    %129 = arith.truncf %126 : vector<64x128xf32> to vector<64x128xbf16>
    %cst_62 = arith.constant dense<0.000000e+00> : vector<64x128xf32>
    %130 = tpu.matmul %129, %128, %cst_62 {dimension_numbers = #tpu.dot_dimension_numbers<[1], [0], [0], [1], [0, 0, 1, 1], [], []>} : vector<64x128xbf16>, vector<128x128xbf16>, vector<64x128xf32> -> vector<64x128xf32>
    %131 = vector.shape_cast %130 : vector<64x128xf32> to vector<4x16x128xf32>
    %132 = arith.addf %5, %131 : vector<4x16x128xf32>
    %c0_63 = arith.constant 0 : index
    %c0_64 = arith.constant 0 : index
    %c0_65 = arith.constant 0 : index
    %133 = vector.load %arg18[%c0_63, %c0_64, %c0_65] : memref<4x16x128xf32, #tpu.memory_space<vmem>>, vector<4x16x128xf32>
    tpu.vector_store %arg18[%c0_63, %c0_64, %c0_65], %132 {strides = array<i32>} : memref<4x16x128xf32, #tpu.memory_space<vmem>>, vector<4x16x128xf32>,
    %c5_i32 = arith.constant 5 : i32
    %134 = arith.cmpi eq, %arg1, %c5_i32 : i32
    %135 = arith.extui %134 : i1 to i32
    %c0_i32_66 = arith.constant 0 : i32
    %136 = arith.cmpi ne, %135, %c0_i32_66 : i32
    scf.if %136 {
      %c0_67 = arith.constant 0 : index
      %c0_68 = arith.constant 0 : index
      %c0_69 = arith.constant 0 : index
      %137 = vector.load %arg18[%c0_67, %c0_68, %c0_69] : memref<4x16x128xf32, #tpu.memory_space<vmem>>, vector<4x16x128xf32>
      %138 = vector.shape_cast %137 : vector<4x16x128xf32> to vector<64x128xf32>
      %c0_70 = arith.constant 0 : index
      %c0_71 = arith.constant 0 : index
      %139 = vector.load %arg13[%c0_70, %c0_71] : memref<128x128xbf16, #tpu.memory_space<vmem>>, vector<128x128xbf16>
      %140 = arith.truncf %138 : vector<64x128xf32> to vector<64x128xbf16>
      %cst_72 = arith.constant dense<0.000000e+00> : vector<64x128xf32>
      %141 = tpu.matmul %140, %139, %cst_72 {dimension_numbers = #tpu.dot_dimension_numbers<[1], [0], [0], [1], [0, 0, 1, 1], [], []>} : vector<64x128xbf16>, vector<128x128xbf16>, vector<64x128xf32> -> vector<64x128xf32>
      %c0_73 = arith.constant 0 : index
      %c0_74 = arith.constant 0 : index
      %142 = vector.load %arg14[%c0_73, %c0_74] : memref<1x128xf32, #tpu.memory_space<vmem>>, vector<1x128xf32>
      %143 = vector.broadcast %142 : vector<1x128xf32> to vector<64x128xf32>
      %144 = arith.addf %141, %143 : vector<64x128xf32>
      %cst_75 = arith.constant 0.000000e+00 : f32
      %145 = vector.broadcast %cst_75 : f32 to vector<64x128xf32>
      %146 = arith.maximumf %144, %145 : vector<64x128xf32>
      %c0_76 = arith.constant 0 : index
      %c0_77 = arith.constant 0 : index
      %147 = vector.load %arg15[%c0_76, %c0_77] : memref<128x128xbf16, #tpu.memory_space<vmem>>, vector<128x128xbf16>
      %148 = arith.truncf %146 : vector<64x128xf32> to vector<64x128xbf16>
      %cst_78 = arith.constant dense<0.000000e+00> : vector<64x128xf32>
      %149 = tpu.matmul %148, %147, %cst_78 {dimension_numbers = #tpu.dot_dimension_numbers<[1], [0], [0], [1], [0, 0, 1, 1], [], []>} : vector<64x128xbf16>, vector<128x128xbf16>, vector<64x128xf32> -> vector<64x128xf32>
      %c0_79 = arith.constant 0 : index
      %c0_80 = arith.constant 0 : index
      %150 = vector.load %arg16[%c0_79, %c0_80] : memref<1x128xf32, #tpu.memory_space<vmem>>, vector<1x128xf32>
      %151 = vector.broadcast %150 : vector<1x128xf32> to vector<64x128xf32>
      %152 = arith.addf %149, %151 : vector<64x128xf32>
      %153 = tpu.iota {dimensions = array<i32: 1>} : vector<64x128xi32>
      %c10_i32 = arith.constant 10 : i32
      %154 = vector.broadcast %c10_i32 : i32 to vector<64x128xi32>
      %155 = arith.cmpi slt, %153, %154 : vector<64x128xi32>
      %cst_81 = arith.constant -1.000000e+30 : f32
      %156 = vector.broadcast %cst_81 : f32 to vector<64x128xf32>
      %157 = arith.select %155, %152, %156 : vector<64x128xi1>, vector<64x128xf32>
      %cst_82 = arith.constant dense<0xFF800000> : vector<64xf32>
      %158 = vector.multi_reduction <maximumf>, %157, %cst_82 [1] : vector<64x128xf32> to vector<64xf32>
      %159 = vector.shape_cast %158 : vector<64xf32> to vector<64x1xf32>
      %160 = vector.broadcast %159 : vector<64x1xf32> to vector<64x128xf32>
      %161 = arith.subf %157, %160 : vector<64x128xf32>
      %162 = math.exp %161 : vector<64x128xf32>
      %cst_83 = arith.constant dense<0.000000e+00> : vector<64xf32>
      %163 = vector.multi_reduction <add>, %162, %cst_83 [1] : vector<64x128xf32> to vector<64xf32>
      %164 = vector.shape_cast %163 : vector<64xf32> to vector<64x1xf32>
      %165 = math.log %164 : vector<64x1xf32>
      %166 = vector.broadcast %165 : vector<64x1xf32> to vector<64x128xf32>
      %167 = arith.subf %161, %166 : vector<64x128xf32>
      %168 = vector.shape_cast %167 : vector<64x128xf32> to vector<4x16x128xf32>
      %c0_84 = arith.constant 0 : index
      %c0_85 = arith.constant 0 : index
      %c0_86 = arith.constant 0 : index
      %169 = vector.load %arg17[%c0_84, %c0_85, %c0_86] : memref<4x16x128xf32, #tpu.memory_space<vmem>>, vector<4x16x128xf32>
      tpu.vector_store %arg17[%c0_84, %c0_85, %c0_86], %168 {strides = array<i32>} : memref<4x16x128xf32, #tpu.memory_space<vmem>>, vector<4x16x128xf32>,
    } else {
    }
    return
  }
  func.func @transform_0(%arg0: i32, %arg1: i32, %arg2: memref<6xi32, #tpu.memory_space<smem>>) -> (i32, i32, i32) {
    %c0_i32 = arith.constant 0 : i32
    %c0_i32_0 = arith.constant 0 : i32
    %c0_i32_1 = arith.constant 0 : i32
    return %arg0, %c0_i32, %c0_i32_0 : i32, i32, i32
  }
  func.func @transform_1(%arg0: i32, %arg1: i32, %arg2: memref<6xi32, #tpu.memory_space<smem>>) -> (i32, i32, i32) {
    %c0_i32 = arith.constant 0 : i32
    %c0_i32_0 = arith.constant 0 : i32
    %c0_i32_1 = arith.constant 0 : i32
    return %arg1, %c0_i32, %c0_i32_0 : i32, i32, i32
  }
  func.func @transform_2(%arg0: i32, %arg1: i32, %arg2: memref<6xi32, #tpu.memory_space<smem>>) -> (i32, i32, i32) {
    %c0_i32 = arith.constant 0 : i32
    %c0_i32_0 = arith.constant 0 : i32
    %c0_i32_1 = arith.constant 0 : i32
    return %arg1, %c0_i32, %c0_i32_0 : i32, i32, i32
  }
  func.func @transform_3(%arg0: i32, %arg1: i32, %arg2: memref<6xi32, #tpu.memory_space<smem>>) -> (i32, i32, i32) {
    %c0_i32 = arith.constant 0 : i32
    %c0_i32_0 = arith.constant 0 : i32
    %c0_i32_1 = arith.constant 0 : i32
    return %arg1, %c0_i32, %c0_i32_0 : i32, i32, i32
  }
  func.func @transform_4(%arg0: i32, %arg1: i32, %arg2: memref<6xi32, #tpu.memory_space<smem>>) -> (i32, i32, i32) {
    %c0_i32 = arith.constant 0 : i32
    %c0_i32_0 = arith.constant 0 : i32
    %c0_i32_1 = arith.constant 0 : i32
    return %arg1, %c0_i32, %c0_i32_0 : i32, i32, i32
  }
  func.func @transform_5(%arg0: i32, %arg1: i32, %arg2: memref<6xi32, #tpu.memory_space<smem>>) -> (i32, i32, i32) {
    %c0_i32 = arith.constant 0 : i32
    %c0_i32_0 = arith.constant 0 : i32
    %c0_i32_1 = arith.constant 0 : i32
    return %arg1, %c0_i32, %c0_i32_0 : i32, i32, i32
  }
  func.func @transform_6(%arg0: i32, %arg1: i32, %arg2: memref<6xi32, #tpu.memory_space<smem>>) -> (i32, i32, i32) {
    %c0_i32 = arith.constant 0 : i32
    %c0_i32_0 = arith.constant 0 : i32
    %c0_i32_1 = arith.constant 0 : i32
    return %arg1, %c0_i32, %c0_i32_0 : i32, i32, i32
  }
  func.func @transform_7(%arg0: i32, %arg1: i32, %arg2: memref<6xi32, #tpu.memory_space<smem>>) -> (i32, i32, i32) {
    %c0_i32 = arith.constant 0 : i32
    %c0_i32_0 = arith.constant 0 : i32
    %c0_i32_1 = arith.constant 0 : i32
    return %arg1, %c0_i32, %c0_i32_0 : i32, i32, i32
  }
  func.func @transform_8(%arg0: i32, %arg1: i32, %arg2: memref<6xi32, #tpu.memory_space<smem>>) -> (i32, i32, i32) {
    %c0_i32 = arith.constant 0 : i32
    %c0_i32_0 = arith.constant 0 : i32
    %c0_i32_1 = arith.constant 0 : i32
    return %arg1, %c0_i32, %c0_i32_0 : i32, i32, i32
  }
  func.func @transform_9(%arg0: i32, %arg1: i32, %arg2: memref<6xi32, #tpu.memory_space<smem>>) -> (i32, i32, i32) {
    %c0_i32 = arith.constant 0 : i32
    %c0_i32_0 = arith.constant 0 : i32
    %c0_i32_1 = arith.constant 0 : i32
    return %arg1, %c0_i32, %c0_i32_0 : i32, i32, i32
  }
  func.func @transform_10(%arg0: i32, %arg1: i32, %arg2: memref<6xi32, #tpu.memory_space<smem>>) -> (i32, i32) {
    %c0_i32 = arith.constant 0 : i32
    %c0_i32_0 = arith.constant 0 : i32
    %c0_i32_1 = arith.constant 0 : i32
    return %c0_i32, %c0_i32_0 : i32, i32
  }
  func.func @transform_11(%arg0: i32, %arg1: i32, %arg2: memref<6xi32, #tpu.memory_space<smem>>) -> (i32, i32) {
    %c0_i32 = arith.constant 0 : i32
    %c0_i32_0 = arith.constant 0 : i32
    %c0_i32_1 = arith.constant 0 : i32
    return %c0_i32, %c0_i32_0 : i32, i32
  }
  func.func @transform_12(%arg0: i32, %arg1: i32, %arg2: memref<6xi32, #tpu.memory_space<smem>>) -> (i32, i32) {
    %c0_i32 = arith.constant 0 : i32
    %c0_i32_0 = arith.constant 0 : i32
    %c0_i32_1 = arith.constant 0 : i32
    return %c0_i32, %c0_i32_0 : i32, i32
  }
  func.func @transform_13(%arg0: i32, %arg1: i32, %arg2: memref<6xi32, #tpu.memory_space<smem>>) -> (i32, i32) {
    %c0_i32 = arith.constant 0 : i32
    %c0_i32_0 = arith.constant 0 : i32
    %c0_i32_1 = arith.constant 0 : i32
    return %c0_i32, %c0_i32_0 : i32, i32
  }
  func.func @transform_14(%arg0: i32, %arg1: i32, %arg2: memref<6xi32, #tpu.memory_space<smem>>) -> (i32, i32, i32) {
    %c0_i32 = arith.constant 0 : i32
    %c0_i32_0 = arith.constant 0 : i32
    %c0_i32_1 = arith.constant 0 : i32
    return %arg0, %c0_i32, %c0_i32_0 : i32, i32, i32
  }
}

</mosaic_0001>

<bundles_post_ra>
// kernel: bytenet_decoder_pallas_nlc.1
= control target key start
LH: loop header
LB: loop body
LE: loop exit
PB: predicated region body
PF: predicated region fallthrough
CT: control target
= control target key end

     0   :  { %s4059_s0 = inlined_call_operand.vmem [shape: s32[6], index: 0, kind: input, shape index: {}]   ;;  %s4060_s1 = inlined_call_operand.vmem [shape: bf16[4,16,128], index: 1, kind: input, shape index: {}]   ;;  %s4061_s2 = inlined_call_operand.vmem [shape: f32[6,1,128], index: 2, kind: input, shape index: {}]   ;;  %s4062_s3 = inlined_call_operand.vmem [shape: f32[6,1,128], index: 3, kind: input, shape index: {}]   ;;  %s4063_s4 = inlined_call_operand.vmem [shape: bf16[6,128,128], index: 4, kind: input, shape index: {}]   ;;  %s4064_s5 = inlined_call_operand.vmem [shape: f32[6,1,128], index: 5, kind: input, shape index: {}]   ;;  %s4065_s6 = inlined_call_operand.vmem [shape: f32[6,1,128], index: 6, kind: input, shape index: {}]   ;;  %s4066_s7 = inlined_call_operand.vmem [shape: bf16[6,384,128], index: 7, kind: input, shape index: {}]   ;;  %s4067_s8 = inlined_call_operand.vmem [shape: f32[6,1,128], index: 8, kind: input, shape index: {}]   ;;  %s4068_s9 = inlined_call_operand.vmem [shape: f32[6,1,128], index: 9, kind: input, shape index: {}]   ;;  %s4069_s10 = inlined_call_operand.vmem [shape: bf16[6,128,128], index: 10, kind: input, shape index: {}]   ;;  %s4070_s11 = inlined_call_operand.vmem [shape: bf16[128,128], index: 11, kind: input, shape index: {}]   ;;  %s4071_s12 = inlined_call_operand.vmem [shape: f32[1,128], index: 12, kind: input, shape index: {}]   ;;  %s4072_s13 = inlined_call_operand.vmem [shape: bf16[128,128], index: 13, kind: input, shape index: {}]   ;;  %s4073_s14 = inlined_call_operand.vmem [shape: f32[1,128], index: 14, kind: input, shape index: {}]   ;;  %s4074_s15 = inlined_call_operand.vmem [shape: f32[4,16,128], index: 15, kind: output, shape index: {}]  }
   0x1   :  { %4079 = sst [smem:[#allocation11_spill]] %s4063_s4  ;;  %s20_s20 = sshll.u32 %s4059_s0, 4  ;;  %s21_s20 = int_to_ptr.vmem [resolvable:$true] %s20_s20 }
   0x2   :  { %4080 = sst [smem:[#allocation12_spill]] %s4071_s12  ;;  %s3378_s21 = scalar_lea.vmem %s21_s20, 16 }
   0x3   :  { %4081 = sst [smem:[#allocation13_spill]] %s4072_s13  ;;  %p3379_p0 = scmp.ne.s32.totalorder %s21_s20, %s3378_s21 }
   0x4   :  { %4082 = sst [smem:[#allocation14_spill]] %s4073_s14  ;;  %p3383_p1 = scmp.lt.s32.totalorder %s21_s20, %s21_s20 }
   0x5   :  { %4083 = sst [smem:[#allocation15_spill]] %s4074_s15  ;;  %p3384_p2 = scmp.lt.s32.totalorder %s3378_s21, %s3378_s21 }
   0x7   :  { %p3385_p3 = por %p3384_p2, %p3383_p1 }
   0x9   :  { %p3386_p4 = pnand %p3385_p3, %p3379_p0 }
   0xb   :  { %3389 = shalt.err (!%p3386_p4)  }
   0xc   :  { %s3416_s22 = smov [#allocation6]  }
   0xd   :  { %23 = dma.vmem_to_smem %s21_s20, 16, %s3416_s22, [#allocation5] }
   0xe   :  { %3402 = dma.done.wait [#allocation5], 16 }
   0xf   :  { %3403 = vsyncadd [#allocation5], 4294967280 }
  0x10   :  { %25 = sfence }
  0x11   :  { %s3501_s23 = smov 0   ;;  %s3503_s24 = smov 0  }
  0x12   :  { %s3505_s25 = smov 0  }
  0x13 LB: > { %4084 = sst [smem:[#allocation8_spill]] %s3410_s24  ;;  %s40_s0 = sadd.s32 1, %s3410_s24  ;;  %s3414_s25 = sphi %s3505_s25, %s31_s25   ;;  %s3410_s24 = sphi %s3503_s24, %s4107_s24   ;;  %s3406_s23 = sphi %s3501_s23, %s4106_s23  }
  0x14   : > { %4085 = sst [smem:[#allocation9_spill]] %s3414_s25  ;;  %p2843_p5 = scmp.ge.s32.totalorder %s3414_s25, 1 }
  0x15   : > { %p41_p6 = scmp.ge.s32.totalorder %s40_s0, 6  ;;  %p511_p7 = scmp.lt.s32.totalorder %s3414_s25, 7 }
  0x17   : > { %s4109_s0 = smov (%p41_p6, %s40_s0), 0  ;;  %p512_p8 = pnand %p2843_p5, %p511_p7 }
  0x18   : > { %4086 = sst [smem:[#allocation10_spill]] %s4109_s0  ;;  %p599_p9 = scmp.lt.s32.totalorder (!%p512_p8), %s3406_s23, 5 }
  0x19   : > { %515 = sbr.rel (%p512_p8) target bundleno = 1716 (0x6b4), region = 76  ;;  %s3523_s26 = sld [smem:[#allocation6 + %s3406_s23]] (!%p512_p8) }
  0x1a   : > { %s4087_s4 = sld [smem:[#allocation11_spill]] (!%p512_p8)  ;;  %p2849_p10 = scmp.ne.s32.totalorder (!%p512_p8), %s3406_s23, 0 }
  0x1e   : > { %s3526_s27 = scalar_select %p599_p9, %s3406_s23, 5 }
  0x1f   : > { %644 = sbr.rel (%p2849_p10) target bundleno = 43 (0x2b), region = 80 }
  0x20   : > { %s2962_s19 = sshll.u32 %s3526_s27, 6  ;;  %s615_s15 = scalar_lea.vmem %s4065_s6, %s3526_s27 }
  0x21   : > { %s3544_s28 = scalar_lea.vmem %s4087_s4, %s2962_s19  ;;  %s3223_s14 = smul.u32 192, %s3526_s27 }
  0x22   : > { %s623_s16 = scalar_lea.vmem %s4067_s8, %s3526_s27  ;;  %s626_s13 = scalar_lea.vmem %s4068_s9, %s3526_s27 }
  0x23   : > { %s3562_s22 = scalar_lea.vmem %s4069_s10, %s2962_s19  ;;  %s3567_s4 = scalar_lea.vmem %s4066_s7, %s3223_s14 }
  0x24   : > { %v2973_v0 = vld [vmem:[%s4060_s1] sm:$0xff]   ;;  %v2998_v1 = vld [vmem:[%s4060_s1 + $0x8] sm:$0xff]   ;;  %v2999_v2 = vld [vmem:[%s4060_s1 + $0x10] sm:$0xff]   ;;  %v3417_v8 = vmov 0  }
  0x25   : > { %v2974_v3 = vunpack.c.l.bf16 %v2973_v0  ;;  %v2975_v4 = vunpack.c.h.bf16 %v2973_v0  ;;  %v2978_v5 = vunpack.c.l.bf16 %v2998_v1  ;;  %v2979_v6 = vunpack.c.h.bf16 %v2998_v1  ;;  %v3000_v7 = vld [vmem:[%s4060_s1 + $0x18] sm:$0xff]   ;;  %669 = vst [vmem:[#allocation3] sm:$0xf] %v3417_v8  ;;  %670 = vst [vmem:[#allocation3 + $0xc] sm:$0xf] %v3417_v8 }
  0x26   : > { %671 = vst [vmem:[#allocation3 + $0x18] sm:$0xf] %v3417_v8  ;;  %672 = vst [vmem:[#allocation3 + $0x24] sm:$0xf] %v3417_v8  ;;  %v2982_v9 = vunpack.c.l.bf16 %v2999_v2  ;;  %v2983_v10 = vunpack.c.h.bf16 %v2999_v2  ;;  %v2986_v11 = vunpack.c.l.bf16 %v3000_v7  ;;  %v2987_v12 = vunpack.c.h.bf16 %v3000_v7 }
  0x27   : > { %661 = vst [vmem:[#allocation2 + $0x30] sm:$0xff] %v2974_v3  ;;  %662 = vst [vmem:[#allocation2] sm:$0xff] %v2975_v4 }
  0x28   : > { %663 = vst [vmem:[#allocation2 + $0x18] sm:$0xff] %v2978_v5  ;;  %664 = vst [vmem:[#allocation2 + $0x10] sm:$0xff] %v2979_v6 }
  0x29   : > { %665 = vst [vmem:[#allocation2 + $0x8] sm:$0xff] %v2982_v9  ;;  %666 = vst [vmem:[#allocation2 + $0x20] sm:$0xff] %v2983_v10 }
  0x2a   : > { %667 = vst [vmem:[#allocation2 + $0x28] sm:$0xff] %v2986_v11  ;;  %668 = vst [vmem:[#allocation2 + $0x38] sm:$0xff] %v2987_v12 }
  0x2b PF: > { %v3250_v13 = vld [vmem:[%s3544_s28 + $0x38] sm:$0xff]   ;;  %v3251_v14 = vld [vmem:[%s3544_s28 + $0x30] sm:$0xff]   ;;  %v3252_v15 = vld [vmem:[%s3544_s28 + $0x28] sm:$0xff]   ;;  %s4088_s21 = scalar_lea.vmem %s4061_s2, %s3526_s27  ;;  %s4089_s25 = scalar_lea.vmem %s4062_s3, %s3526_s27 }
  0x2c   : > { %3103 = vmatprep.subr.bf16.mxu0 %v3250_v13  ;;  %v3253_v16 = vld [vmem:[%s3544_s28 + $0x20] sm:$0xff]   ;;  %v3254_v35 = vld [vmem:[%s3544_s28 + $0x18] sm:$0xff]   ;;  %v3255_v52 = vld [vmem:[%s3544_s28 + $0x10] sm:$0xff]   ;;  %s4090_s18 = scalar_lea.vmem %s4064_s5, %s3526_s27  ;;  %p2870_p11 = scmp.ne.s32.totalorder %s3523_s26, 1 }
  0x2d   : > { %3104 = vmatpush3.bf16.msra.mxu0 %v3250_v13  ;;  %v3256_v5 = vld [vmem:[%s3544_s28 + $0x8] sm:$0xff]  }
  0x2e   : > { %3105 = vmatprep.subr.bf16.mxu0 %v3251_v14  ;;  %v3586_v17 = vld [vmem:[#allocation2 + $0x30] sm:$0xff]  ;;  %v3588_v18 = vld [vmem:[#allocation2] sm:$0xff] }
  0x2f   : > { %v683_v19 = vadd.f32 %v3588_v18, %v3586_v17  ;;  %v716_v20 = vmul.f32 %v3586_v17, %v3586_v17  ;;  %v717_v21 = vmul.f32 %v3588_v18, %v3588_v18  ;;  %v3596_v22 = vld [vmem:[#allocation2 + $0x18] sm:$0xff]  ;;  %v3598_v23 = vld [vmem:[#allocation2 + $0x10] sm:$0xff] }
  0x30   : > { %v690_v24 = vadd.f32 %v3598_v23, %v3596_v22  ;;  %v718_v25 = vmul.f32 %v3596_v22, %v3596_v22  ;;  %v719_v26 = vmul.f32 %v3598_v23, %v3598_v23  ;;  %v3606_v27 = vld [vmem:[#allocation2 + $0x8] sm:$0xff]  ;;  %v3608_v28 = vld [vmem:[#allocation2 + $0x20] sm:$0xff] }
  0x31   : > { %3106 = vmatpush3.bf16.msra.mxu0 %v3251_v14  ;;  %v3610_v29 = vld [vmem:[#allocation2 + $0x28] sm:$0xff]  ;;  %v684_v30 = vrot.slane %v683_v19, 4  ;;  %v724_v31 = vadd.f32 %v717_v21, %v716_v20  ;;  %v697_v32 = vadd.f32 %v3608_v28, %v3606_v27  ;;  %v720_v33 = vmul.f32 %v3606_v27, %v3606_v27  ;;  %v3616_v34 = vld [vmem:[#allocation2 + $0x38] sm:$0xff] }
  0x32   : > { %3107 = vmatprep.subr.bf16.mxu0 %v3252_v15  ;;  %v691_v36 = vrot.slane %v690_v24, 4  ;;  %v731_v37 = vadd.f32 %v719_v26, %v718_v25  ;;  %v721_v38 = vmul.f32 %v3608_v28, %v3608_v28  ;;  %v704_v39 = vadd.f32 %v3616_v34, %v3610_v29  ;;  %v3257_v26 = vld [vmem:[%s3544_s28] sm:$0xff]  }
  0x33   : > { %v685_v40 = vadd.f32 %v684_v30, %v683_v19  ;;  %v725_v41 = vrot.slane %v724_v31, 4  ;;  %v698_v42 = vrot.slane %v697_v32, 4  ;;  %v722_v43 = vmul.f32 %v3610_v29, %v3610_v29 }
  0x34   : > { %v692_v44 = vadd.f32 %v691_v36, %v690_v24  ;;  %v732_v45 = vrot.slane %v731_v37, 4  ;;  %v738_v46 = vadd.f32 %v721_v38, %v720_v33  ;;  %v705_v47 = vrot.slane %v704_v39, 4 }
  0x35   : > { %3108 = vmatpush3.bf16.msra.mxu0 %v3252_v15  ;;  %v686_v48 = vrot.slane %v685_v40, 2  ;;  %v726_v49 = vadd.f32 %v725_v41, %v724_v31  ;;  %v699_v50 = vadd.f32 %v698_v42, %v697_v32  ;;  %v723_v51 = vmul.f32 %v3616_v34, %v3616_v34 }
  0x36   : > { %3109 = vmatprep.subr.bf16.mxu0 %v3253_v16  ;;  %v693_v53 = vrot.slane %v692_v44, 2  ;;  %v733_v54 = vadd.f32 %v732_v45, %v731_v37  ;;  %v739_v55 = vrot.slane %v738_v46, 4  ;;  %v706_v56 = vadd.f32 %v705_v47, %v704_v39 }
  0x37   : > { %v687_v57 = vadd.f32 %v686_v48, %v685_v40  ;;  %v727_v58 = vrot.slane %v726_v49, 2  ;;  %v700_v59 = vrot.slane %v699_v50, 2  ;;  %v745_v60 = vadd.f32 %v723_v51, %v722_v43 }
  0x38   : > { %v694_v61 = vadd.f32 %v693_v53, %v692_v44  ;;  %v734_v62 = vrot.slane %v733_v54, 2  ;;  %v740_v63 = vadd.f32 %v739_v55, %v738_v46  ;;  %v707_v0 = vrot.slane %v706_v56, 2 }
  0x39   : > { %3110 = vmatpush3.bf16.msra.mxu0 %v3253_v16  ;;  %v688_v1 = vrot.slane %v687_v57, 1  ;;  %v728_v2 = vadd.f32 %v727_v58, %v726_v49  ;;  %v701_v3 = vadd.f32 %v700_v59, %v699_v50  ;;  %v746_v4 = vrot.slane %v745_v60, 4 }
  0x3a   : > { %3111 = vmatprep.subr.bf16.mxu0 %v3254_v35  ;;  %v695_v6 = vrot.slane %v694_v61, 1  ;;  %v735_v7 = vadd.f32 %v734_v62, %v733_v54  ;;  %v741_v8 = vrot.slane %v740_v63, 2  ;;  %v708_v9 = vadd.f32 %v707_v0, %v706_v56 }
  0x3b   : > { %v689_v10 = vadd.f32 %v688_v1, %v687_v57  ;;  %v729_v11 = vrot.slane %v728_v2, 1  ;;  %v702_v12 = vrot.slane %v701_v3, 1  ;;  %v747_v13 = vadd.f32 %v746_v4, %v745_v60 }
  0x3c   : > { %v696_v14 = vadd.f32 %v695_v6, %v694_v61  ;;  %v736_v15 = vrot.slane %v735_v7, 1  ;;  %v742_v16 = vadd.f32 %v741_v8, %v740_v63  ;;  %v709_v19 = vrot.slane %v708_v9, 1  ;;  %v2851_v8 = vld [vmem:[%s4089_s25] ss:$0 sm:$0xff] }
  0x3d   : > { %3112 = vmatpush3.bf16.msra.mxu0 %v3254_v35  ;;  %v712_v20 = vmul.f32 0.0625, %v689_v10  ;;  %v730_v21 = vadd.f32 %v729_v11, %v728_v2  ;;  %v703_v24 = vadd.f32 %v702_v12, %v701_v3  ;;  %v748_v25 = vrot.slane %v747_v13, 2  ;;  %v2850_v2 = vld [vmem:[%s4088_s21] ss:$0 sm:$0xff] }
  0x3e   : > { %3113 = vmatprep.subr.bf16.mxu0 %v3255_v52  ;;  %v713_v30 = vmul.f32 0.0625, %v696_v14  ;;  %v737_v31 = vadd.f32 %v736_v15, %v735_v7  ;;  %v743_v32 = vrot.slane %v742_v16, 1  ;;  %v710_v33 = vadd.f32 %v709_v19, %v708_v9 }
  0x3f   : > { %v752_v35 = vmul.f32 0.0625, %v730_v21  ;;  %v756_v36 = vmul.f32 %v712_v20, %v712_v20  ;;  %v714_v40 = vmul.f32 0.0625, %v703_v24  ;;  %v749_v44 = vadd.f32 %v748_v25, %v747_v13 }
  0x40   : > { %v753_v37 = vmul.f32 0.0625, %v737_v31  ;;  %v757_v38 = vmul.f32 %v713_v30, %v713_v30  ;;  %v744_v41 = vadd.f32 %v743_v32, %v742_v16  ;;  %v3630_v43 = vmul.f32 0.0625, %v710_v33 }
  0x41   : > { %3114 = vmatpush3.bf16.msra.mxu0 %v3255_v52  ;;  %v760_v39 = vsub.f32 %v752_v35, %v756_v36  ;;  %v758_v47 = vmul.f32 %v714_v40, %v714_v40  ;;  %v750_v49 = vrot.slane %v749_v44, 1  ;;  %v768_v61 = vsub.f32 %v3586_v17, %v712_v20 }
  0x42   : > { %3115 = vmatprep.subr.bf16.mxu0 %v3256_v5  ;;  %v761_v42 = vsub.f32 %v753_v37, %v757_v38  ;;  %v754_v46 = vmul.f32 0.0625, %v744_v41  ;;  %v759_v54 = vmul.f32 %v3630_v43, %v3630_v43  ;;  %v769_v62 = vsub.f32 %v3588_v18, %v712_v20 }
  0x43   : > { %v764_v45 = vmax.f32 %v760_v39, 0.0  ;;  %v751_v53 = vadd.f32 %v750_v49, %v749_v44  ;;  %v770_v63 = vsub.f32 %v3596_v22, %v713_v30  ;;  %v771_v0 = vsub.f32 %v3598_v23, %v713_v30 }
  0x44   : > { %v765_v48 = vmax.f32 %v761_v42, 0.0  ;;  %v762_v51 = vsub.f32 %v754_v46, %v758_v47  ;;  %v772_v6 = vsub.f32 %v3606_v27, %v714_v40  ;;  %v773_v7 = vsub.f32 %v3608_v28, %v714_v40 }
  0x45   : > { %3116 = vmatpush3.bf16.msra.mxu0 %v3256_v5  ;;  %v776_v50 = vadd.f32 1e-05, %v764_v45  ;;  %v755_v56 = vmul.f32 0.0625, %v751_v53  ;;  %v775_v30 = vsub.f32 %v3616_v34, %v3630_v43 }
  0x46   : > { %3117 = vmatprep.subr.bf16.mxu0 %v3257_v26  ;;  %v777_v52 = vadd.f32 1e-05, %v765_v48  ;;  %v766_v55 = vmax.f32 %v762_v51, 0.0 }
  0x47   : > { %3258 = vrsqrt.f32 %v776_v50  ;;  %v763_v58 = vsub.f32 %v755_v56, %v759_v54 }
  0x48   : > { %3260 = vrsqrt.f32 %v777_v52  ;;  %v778_v57 = vadd.f32 1e-05, %v766_v55 }
  0x49   : > { %3118 = vmatpush3.bf16.msra.mxu0 %v3257_v26  ;;  %v767_v59 = vmax.f32 %v763_v58, 0.0  ;;  %v774_v26 = vsub.f32 %v3610_v29, %v3630_v43 }
  0x4a   : > { %3262 = vrsqrt.f32 %v778_v57 }
  0x4b   : > { %v779_v60 = vadd.f32 1e-05, %v767_v59 }
  0x4d   : > { %3264 = vrsqrt.f32 %v779_v60 }
  0x54   : > { %v3259_v1 = vpop.eup %3258 }
  0x55   : > { %v3261_v3 = vpop.eup %3260  ;;  %v784_v4 = vmul.f32 %v3259_v1, %v768_v61  ;;  %v785_v5 = vmul.f32 %v3259_v1, %v769_v62 }
  0x56   : > { %v786_v9 = vmul.f32 %v3261_v3, %v770_v63  ;;  %v787_v10 = vmul.f32 %v3261_v3, %v771_v0 }
  0x57   : > { %v798_v11 = vmul.f32 %v2850_v2, %v784_v4  ;;  %v799_v12 = vmul.f32 %v2850_v2, %v785_v5  ;;  %v3263_v13 = vpop.eup %3262 }
  0x58   : > { %v800_v14 = vmul.f32 %v2850_v2, %v786_v9  ;;  %v801_v15 = vmul.f32 %v2850_v2, %v787_v10  ;;  %v788_v20 = vmul.f32 %v3263_v13, %v772_v6  ;;  %v789_v21 = vmul.f32 %v3263_v13, %v773_v7 }
  0x59   : > { %v812_v16 = vadd.f32 %v2851_v8, %v798_v11  ;;  %v813_v19 = vadd.f32 %v2851_v8, %v799_v12 }
  0x5a   : > { %v814_v24 = vadd.f32 %v2851_v8, %v800_v14  ;;  %v815_v25 = vadd.f32 %v2851_v8, %v801_v15  ;;  %v802_v33 = vmul.f32 %v2850_v2, %v788_v20  ;;  %v803_v35 = vmul.f32 %v2850_v2, %v789_v21  ;;  %v3265_v38 = vpop.eup %3264 }
  0x5b   : > { %v820_v31 = vmax.f32 %v812_v16, 0.0  ;;  %v821_v32 = vmax.f32 %v813_v19, 0.0  ;;  %v790_v44 = vmul.f32 %v3265_v38, %v774_v26  ;;  %v791_v45 = vmul.f32 %v3265_v38, %v775_v30 }
  0x5c   : > { %v822_v36 = vmax.f32 %v814_v24, 0.0  ;;  %v823_v37 = vmax.f32 %v815_v25, 0.0  ;;  %v816_v40 = vadd.f32 %v2851_v8, %v802_v33  ;;  %v817_v41 = vadd.f32 %v2851_v8, %v803_v35 }
  0x5d   : > { %v844_v39 = vpack.c.bf16 %v821_v32, %v820_v31  ;;  %v804_v48 = vmul.f32 %v2850_v2, %v790_v44  ;;  %v805_v49 = vmul.f32 %v2850_v2, %v791_v45 }
  0x5e   : > { %v845_v42 = vpack.c.bf16 %v823_v37, %v822_v36  ;;  %v824_v46 = vmax.f32 %v816_v40, 0.0  ;;  %v825_v47 = vmax.f32 %v817_v41, 0.0 }
  0x5f   : > { %3119 = vmatprep.mubr.bf16.mxu0 %v844_v39  ;;  %v818_v50 = vadd.f32 %v2851_v8, %v804_v48  ;;  %v819_v51 = vadd.f32 %v2851_v8, %v805_v49 }
  0x60   : > { %3120 = vmatmul.mubr.bf16.vlgmr.msra.gmra.mxu0 %v845_v42  ;;  %v846_v43 = vpack.c.bf16 %v825_v47, %v824_v46 }
  0x61   : > { %v826_v52 = vmax.f32 %v818_v50, 0.0  ;;  %v827_v53 = vmax.f32 %v819_v51, 0.0 }
  0x62   : > { %3123 = vmatprep.mubr.bf16.mxu0 %v846_v43 }
  0x63   : > { %v847_v54 = vpack.c.bf16 %v827_v53, %v826_v52 }
  0x68   : > { %3124 = vmatmul.mubr.bf16.gmra.mxu0 %v847_v54 }
 0x120   : > { %v3654_v55 = vpop.f32.mrf.mxu0 }
 0x121   : > { %v997_v58 = vmul.f32 %v3654_v55, %v3654_v55 }
 0x122   : > { %v3656_v56 = vpop.f32.mrf.mxu0 }
 0x123   : > { %v995_v61 = vmul.f32 %v3656_v56, %v3656_v56 }
 0x124   : > { %v3658_v57 = vpop.f32.mrf.mxu0 }
 0x125   : > { %v970_v59 = vadd.f32 %v3658_v57, %v3654_v55  ;;  %v998_v60 = vmul.f32 %v3658_v57, %v3658_v57 }
 0x126   : > { %v3668_v62 = vpop.f32.mrf.mxu0 }
 0x127   : > { %v971_v63 = vrot.slane %v970_v59, 4  ;;  %v1010_v0 = vadd.f32 %v998_v60, %v997_v58  ;;  %v963_v1 = vadd.f32 %v3668_v62, %v3656_v56  ;;  %v996_v2 = vmul.f32 %v3668_v62, %v3668_v62 }
 0x128   : > { %v3674_v3 = vpop.f32.mrf.mxu0 }
 0x129   : > { %v972_v4 = vadd.f32 %v971_v63, %v970_v59  ;;  %v1011_v5 = vrot.slane %v1010_v0, 4  ;;  %v964_v6 = vrot.slane %v963_v1, 4  ;;  %v1003_v7 = vadd.f32 %v996_v2, %v995_v61 }
 0x12a   : > { %v3676_v8 = vpop.f32.mrf.mxu0  ;;  %v1001_v20 = vmul.f32 %v3674_v3, %v3674_v3 }
 0x12b   : > { %v973_v9 = vrot.slane %v972_v4, 2  ;;  %v1012_v10 = vadd.f32 %v1011_v5, %v1010_v0  ;;  %v965_v11 = vadd.f32 %v964_v6, %v963_v1  ;;  %v1004_v12 = vrot.slane %v1003_v7, 4 }
 0x12c   : > { %v3678_v13 = vpop.f32.mrf.mxu0  ;;  %v999_v21 = vmul.f32 %v3676_v8, %v3676_v8 }
 0x12d   : > { %v974_v14 = vadd.f32 %v973_v9, %v972_v4  ;;  %v1013_v15 = vrot.slane %v1012_v10, 2  ;;  %v966_v16 = vrot.slane %v965_v11, 2  ;;  %v1005_v19 = vadd.f32 %v1004_v12, %v1003_v7 }
 0x12e   : > { %v984_v24 = vadd.f32 %v3678_v13, %v3674_v3  ;;  %v1002_v25 = vmul.f32 %v3678_v13, %v3678_v13  ;;  %v3688_v26 = vpop.f32.mrf.mxu0 }
 0x12f   : > { %v975_v30 = vrot.slane %v974_v14, 1  ;;  %v1014_v31 = vadd.f32 %v1013_v15, %v1012_v10  ;;  %v967_v32 = vadd.f32 %v966_v16, %v965_v11  ;;  %v1006_v33 = vrot.slane %v1005_v19, 2 }
 0x130   : > { %v985_v35 = vrot.slane %v984_v24, 4  ;;  %v1024_v36 = vadd.f32 %v1002_v25, %v1001_v20  ;;  %v977_v37 = vadd.f32 %v3688_v26, %v3676_v8  ;;  %v1000_v38 = vmul.f32 %v3688_v26, %v3688_v26 }
 0x131   : > { %v976_v39 = vadd.f32 %v975_v30, %v974_v14  ;;  %v1015_v40 = vrot.slane %v1014_v31, 1  ;;  %v968_v41 = vrot.slane %v967_v32, 1  ;;  %v1007_v42 = vadd.f32 %v1006_v33, %v1005_v19 }
 0x132   : > { %v986_v44 = vadd.f32 %v985_v35, %v984_v24  ;;  %v1025_v45 = vrot.slane %v1024_v36, 4  ;;  %v978_v46 = vrot.slane %v977_v37, 4  ;;  %v1017_v47 = vadd.f32 %v1000_v38, %v999_v21 }
 0x133   : > { %v992_v48 = vmul.f32 0.0625, %v976_v39  ;;  %v1016_v49 = vadd.f32 %v1015_v40, %v1014_v31  ;;  %v969_v43 = vadd.f32 %v968_v41, %v967_v32  ;;  %v1008_v50 = vrot.slane %v1007_v42, 1 }
 0x134   : > { %v987_v51 = vrot.slane %v986_v44, 2  ;;  %v1026_v52 = vadd.f32 %v1025_v45, %v1024_v36  ;;  %v979_v53 = vadd.f32 %v978_v46, %v977_v37  ;;  %v1018_v54 = vrot.slane %v1017_v47, 4 }
 0x135   : > { %v1032_v58 = vmul.f32 0.0625, %v1016_v49  ;;  %v1036_v59 = vmul.f32 %v992_v48, %v992_v48  ;;  %v991_v60 = vmul.f32 0.0625, %v969_v43  ;;  %v1009_v61 = vadd.f32 %v1008_v50, %v1007_v42 }
 0x136   : > { %v988_v63 = vadd.f32 %v987_v51, %v986_v44  ;;  %v1027_v0 = vrot.slane %v1026_v52, 2  ;;  %v980_v2 = vrot.slane %v979_v53, 2  ;;  %v1019_v4 = vadd.f32 %v1018_v54, %v1017_v47  ;;  %v2860_v51 = vld [vmem:[%s4090_s18] ss:$0 sm:$0xff] }
 0x137   : > { %v1040_v1 = vsub.f32 %v1032_v58, %v1036_v59  ;;  %v1031_v5 = vmul.f32 0.0625, %v1009_v61  ;;  %v1035_v6 = vmul.f32 %v991_v60, %v991_v60  ;;  %v1049_v49 = vsub.f32 %v3654_v55, %v992_v48  ;;  %v2861_v54 = vld [vmem:[%s615_s15] ss:$0 sm:$0xff] }
 0x138   : > { %v989_v9 = vrot.slane %v988_v63, 1  ;;  %v1028_v10 = vadd.f32 %v1027_v0, %v1026_v52  ;;  %v981_v11 = vadd.f32 %v980_v2, %v979_v53  ;;  %v1020_v14 = vrot.slane %v1019_v4, 2 }
 0x139   : > { %v1044_v7 = vmax.f32 %v1040_v1, 0.0  ;;  %v1039_v12 = vsub.f32 %v1031_v5, %v1035_v6  ;;  %v1050_v43 = vsub.f32 %v3658_v57, %v992_v48  ;;  %v1047_v58 = vsub.f32 %v3656_v56, %v991_v60 }
 0x13a   : > { %v990_v16 = vadd.f32 %v989_v9, %v988_v63  ;;  %v1029_v19 = vrot.slane %v1028_v10, 1  ;;  %v982_v20 = vrot.slane %v981_v11, 1  ;;  %v1021_v24 = vadd.f32 %v1020_v14, %v1019_v4 }
 0x13b   : > { %v1056_v15 = vadd.f32 1e-05, %v1044_v7  ;;  %v1043_v21 = vmax.f32 %v1039_v12, 0.0  ;;  %v1048_v55 = vsub.f32 %v3668_v62, %v991_v60 }
 0x13c   : > { %v994_v25 = vmul.f32 0.0625, %v990_v16  ;;  %v1030_v30 = vadd.f32 %v1029_v19, %v1028_v10  ;;  %v983_v31 = vadd.f32 %v982_v20, %v981_v11  ;;  %v1022_v33 = vrot.slane %v1021_v24, 1 }
 0x13d   : > { %3266 = vrsqrt.f32 %v1056_v15  ;;  %v1055_v32 = vadd.f32 1e-05, %v1043_v21 }
 0x13e   : > { %v1034_v35 = vmul.f32 0.0625, %v1030_v30  ;;  %v1038_v36 = vmul.f32 %v994_v25, %v994_v25  ;;  %v993_v37 = vmul.f32 0.0625, %v983_v31  ;;  %v1023_v38 = vadd.f32 %v1022_v33, %v1021_v24 }
 0x13f   : > { %3268 = vrsqrt.f32 %v1055_v32  ;;  %v1053_v10 = vsub.f32 %v3674_v3, %v994_v25  ;;  %v1054_v62 = vsub.f32 %v3678_v13, %v994_v25 }
 0x140   : > { %v1042_v39 = vsub.f32 %v1034_v35, %v1038_v36  ;;  %v1033_v40 = vmul.f32 0.0625, %v1023_v38  ;;  %v1037_v41 = vmul.f32 %v993_v37, %v993_v37  ;;  %v1051_v24 = vsub.f32 %v3676_v8, %v993_v37 }
 0x141   : > { %v1052_v30 = vsub.f32 %v3688_v26, %v993_v37 }
 0x142   : > { %v1046_v42 = vmax.f32 %v1042_v39, 0.0  ;;  %v1041_v44 = vsub.f32 %v1033_v40, %v1037_v41 }
 0x144   : > { %v1058_v45 = vadd.f32 1e-05, %v1046_v42  ;;  %v1045_v46 = vmax.f32 %v1041_v44, 0.0 }
 0x146   : > { %3270 = vrsqrt.f32 %v1058_v45  ;;  %v1057_v47 = vadd.f32 1e-05, %v1045_v46 }
 0x148   : > { %3272 = vrsqrt.f32 %v1057_v47 }
 0x14a   : > { %v3267_v50 = vpop.eup %3266 }
 0x14b   : > { %v1065_v52 = vmul.f32 %v3267_v50, %v1049_v49  ;;  %v1066_v53 = vmul.f32 %v3267_v50, %v1050_v43 }
 0x14c   : > { %v3269_v59 = vpop.eup %3268 }
 0x14d   : > { %v1079_v57 = vmul.f32 %v2860_v51, %v1065_v52  ;;  %v1080_v48 = vmul.f32 %v2860_v51, %v1066_v53  ;;  %v1063_v61 = vmul.f32 %v3269_v59, %v1047_v58  ;;  %v1064_v63 = vmul.f32 %v3269_v59, %v1048_v55 }
 0x14f   : > { %v1093_v0 = vadd.f32 %v2861_v54, %v1079_v57  ;;  %v1094_v1 = vadd.f32 %v2861_v54, %v1080_v48  ;;  %v1077_v2 = vmul.f32 %v2860_v51, %v1063_v61  ;;  %v1078_v4 = vmul.f32 %v2860_v51, %v1064_v63 }
 0x151   : > { %v1101_v5 = vmax.f32 %v1093_v0, 0.0  ;;  %v1102_v6 = vmax.f32 %v1094_v1, 0.0  ;;  %v1091_v7 = vadd.f32 %v2861_v54, %v1077_v2  ;;  %v1092_v9 = vadd.f32 %v2861_v54, %v1078_v4 }
 0x153   : > { %v2966_v11 = vpack.c.bf16 %v1101_v5, %v1101_v5  ;;  %v2967_v12 = vpack.c.bf16 %v1102_v6, %v1102_v6  ;;  %v2991_v56 = vpack.c.bf16 %v1102_v6, %v1101_v5  ;;  %v3271_v60 = vpop.eup %3270  ;;  %v1099_v14 = vmax.f32 %v1091_v7, 0.0 }
 0x154   : > { %v1100_v15 = vmax.f32 %v1092_v9, 0.0  ;;  %v1069_v16 = vmul.f32 %v3271_v60, %v1053_v10  ;;  %v1070_v19 = vmul.f32 %v3271_v60, %v1054_v62 }
 0x155   : > { %3001 = vst [vmem:[#allocation3 + $0x10] sm:$0xff] %v2991_v56   ;;  %1149 = vst [vmem:[#allocation4 + $0x20] sm:$0xf] %v2966_v11  ;;  %v2964_v20 = vpack.c.bf16 %v1099_v14, %v1099_v14  ;;  %v3273_v3 = vpop.eup %3272 }
 0x156   : > { %1150 = vst [vmem:[#allocation4 + $0x2c] sm:$0xf] %v2967_v12  ;;  %v2965_v21 = vpack.c.bf16 %v1100_v15, %v1100_v15  ;;  %v1083_v31 = vmul.f32 %v2860_v51, %v1069_v16  ;;  %v1084_v32 = vmul.f32 %v2860_v51, %v1070_v19  ;;  %v1067_v13 = vmul.f32 %v3273_v3, %v1051_v24 }
 0x157   : > { %1139 = vst [vmem:[#allocation3 + $0x4] sm:$0xf] %v2964_v20  ;;  %1147 = vst [vmem:[#allocation4 + $0x8] sm:$0xf] %v2964_v20  ;;  %v1068_v25 = vmul.f32 %v3273_v3, %v1052_v30 }
 0x158   : > { %1140 = vst [vmem:[#allocation3 + $0x8] sm:$0xf] %v2965_v21  ;;  %1148 = vst [vmem:[#allocation4 + $0x14] sm:$0xf] %v2965_v21  ;;  %v1097_v33 = vadd.f32 %v2861_v54, %v1083_v31  ;;  %v1098_v35 = vadd.f32 %v2861_v54, %v1084_v32  ;;  %v1081_v36 = vmul.f32 %v2860_v51, %v1067_v13 }
 0x159   : > { %v1082_v38 = vmul.f32 %v2860_v51, %v1068_v25 }
 0x15a   : > { %v1105_v39 = vmax.f32 %v1097_v33, 0.0  ;;  %v1106_v40 = vmax.f32 %v1098_v35, 0.0  ;;  %v1095_v41 = vadd.f32 %v2861_v54, %v1081_v36 }
 0x15b   : > { %v1096_v42 = vadd.f32 %v2861_v54, %v1082_v38 }
 0x15c   : > { %v2970_v8 = vpack.c.bf16 %v1105_v39, %v1105_v39  ;;  %v2971_v44 = vpack.c.bf16 %v1106_v40, %v1106_v40  ;;  %v2996_v26 = vpack.c.bf16 %v1106_v40, %v1105_v39  ;;  %v1103_v37 = vmax.f32 %v1095_v41, 0.0 }
 0x15d   : > { %v1104_v45 = vmax.f32 %v1096_v42, 0.0  ;;  %1158 = sbr.rel (%p2870_p11) target bundleno = 384 (0x180), region = 84 }
 0x15e   : > { %3002 = vst [vmem:[#allocation3 + $0x28] sm:$0xff] %v2996_v26   ;;  %1153 = vst [vmem:[#allocation4 + $0x50] sm:$0xf] %v2970_v8  ;;  %v2968_v46 = vpack.c.bf16 %v1103_v37, %v1103_v37 }
 0x15f   : > { %1154 = vst [vmem:[#allocation4 + $0x5c] sm:$0xf] %v2971_v44  ;;  %v2969_v47 = vpack.c.bf16 %v1104_v45, %v1104_v45 }
 0x160   : > { %1143 = vst [vmem:[#allocation3 + $0x1c] sm:$0xf] %v2968_v46  ;;  %1151 = vst [vmem:[#allocation4 + $0x38] sm:$0xf] %v2968_v46 }
 0x161   : > { %1144 = vst [vmem:[#allocation3 + $0x20] sm:$0xf] %v2969_v47  ;;  %1152 = vst [vmem:[#allocation4 + $0x44] sm:$0xf] %v2969_v47 }
 0x162   : > { %v1159_v49 = vld [vmem:[#allocation3] sm:$0x8]  ;;  %v1160_v43 = vld [vmem:[#allocation3 + $0x4] sm:$0xf]  ;;  %vm1183_vm0 = vcmask 1040384   ;;  %vm1184_vm1 = vcmask 1044484  }
 0x163   : > { %vm3713_vm2 = vmor %vm1183_vm0, %vm1184_vm1  ;;  %v2871_v51 = vrot.slane %v1159_v49, 11  ;;  %v1188_v52 = vrot.slane %v1160_v43, 7  ;;  %v1161_v53 = vld [vmem:[#allocation3 + $0x8] sm:$0x7]  ;;  %v1162_v54 = vld [vmem:[#allocation3 + $0xc] sm:$0x8] }
 0x164   : > { %v1191_v58 = vrot.slane %v1161_v53, 7  ;;  %v1163_v55 = vld [vmem:[#allocation3 + $0x10] sm:$0xf]  ;;  %v2872_v59 = vrot.slane %v1162_v54, 11  ;;  %v1164_v57 = vld [vmem:[#allocation3 + $0x14] sm:$0x7] }
 0x165   : > { %v1189_v48 = vsel %vm3713_vm2, %v2871_v51, %v1188_v52  ;;  %v1190_v61 = vrot.slane %v1188_v52, 4  ;;  %v1195_v63 = vrot.slane %v1163_v55, 7  ;;  %v1198_v0 = vrot.slane %v1164_v57, 7  ;;  %v1165_v1 = vld [vmem:[#allocation3 + $0x18] sm:$0x8] }
 0x166   : > { %1222 = vst [vmem:[#allocation4] sm:$0xf] %v1189_v48  ;;  %v2873_v4 = vrot.slane %v1165_v1, 11  ;;  %v1168_v11 = vld [vmem:[#allocation3 + $0x24] sm:$0x8] }
 0x167   : > { %v1166_v2 = vld [vmem:[#allocation3 + $0x1c] sm:$0xf]  ;;  %v1192_v6 = vsel %vm3713_vm2, %v1190_v61, %v1191_v58  ;;  %v1196_v7 = vsel %vm3713_vm2, %v2872_v59, %v1195_v63  ;;  %v1197_v9 = vrot.slane %v1195_v63, 4  ;;  %v1169_v12 = vld [vmem:[#allocation3 + $0x28] sm:$0xf]  ;;  %v2874_v62 = vrot.slane %v1168_v11, 11 }
 0x168   : > { %v1167_v5 = vld [vmem:[#allocation3 + $0x20] sm:$0x7]  ;;  %v1202_v10 = vrot.slane %v1166_v2, 7  ;;  %1223 = vst [vmem:[#allocation4 + $0xc] sm:$0xf] %v1192_v6  ;;  %v1209_v60 = vrot.slane %v1169_v12, 7 }
 0x169   : > { %1224 = vst [vmem:[#allocation4 + $0x18] sm:$0xf] %v1196_v7  ;;  %v1205_v56 = vrot.slane %v1167_v5, 7  ;;  %v1170_v14 = vld [vmem:[#allocation3 + $0x2c] sm:$0x7]  ;;  %v1199_v15 = vsel %vm3713_vm2, %v1197_v9, %v1198_v0 }
 0x16a   : > { %v1203_v16 = vsel %vm3713_vm2, %v2873_v4, %v1202_v10  ;;  %v1204_v19 = vrot.slane %v1202_v10, 4  ;;  %v1212_v20 = vrot.slane %v1170_v14, 7  ;;  %v1230_v21 = vld [vmem:[#allocation3] sm:$0x8]  ;;  %v1231_v24 = vld [vmem:[#allocation3 + $0x4] sm:$0xf]  ;;  %v1210_v30 = vsel %vm3713_vm2, %v2874_v62, %v1209_v60 }
 0x16b   : > { %1225 = vst [vmem:[#allocation4 + $0x24] sm:$0xf] %v1199_v15  ;;  %1226 = vst [vmem:[#allocation4 + $0x30] sm:$0xf] %v1203_v16  ;;  %v1211_v3 = vrot.slane %v1209_v60, 4  ;;  %v1246_v32 = vshrl.u32 %v1230_v21, 16 }
 0x16c   : > { %vm1242_vm3 = vsmask.f32 256  ;;  %vm1243_vm4 = vsmask.f32 4368  ;;  %v1206_v31 = vsel %vm3713_vm2, %v1204_v19, %v1205_v56  ;;  %1228 = vst [vmem:[#allocation4 + $0x48] sm:$0xf] %v1210_v30 }
 0x16d   : > { %v1251_v13 = vshrl.u32 %v1231_v24, 16  ;;  %v1254_v25 = vshll.u32 %v1231_v24, 16  ;;  %v1232_v33 = vld [vmem:[#allocation3 + $0x8] sm:$0xf]  ;;  %1227 = vst [vmem:[#allocation4 + $0x3c] sm:$0xf] %v1206_v31  ;;  %v1213_v35 = vsel %vm3713_vm2, %v1211_v3, %v1212_v20  ;;  %vm3735_vm5 = vmor %vm1242_vm3, %vm1243_vm4 }
 0x16e   : > { %v1260_v36 = vshrl.u32 %v1232_v33, 16  ;;  %v1263_v38 = vshll.u32 %v1232_v33, 16  ;;  %v1233_v39 = vld [vmem:[#allocation3 + $0xc] sm:$0x8]  ;;  %v1234_v40 = vld [vmem:[#allocation3 + $0x10] sm:$0xf] }
 0x16f   : > { %1229 = vst [vmem:[#allocation4 + $0x54] sm:$0xf] %v1213_v35  ;;  %v2875_v41 = vrot.slane %v1246_v32, 11  ;;  %v1253_v42 = vrot.slane %v1251_v13, 7  ;;  %v1268_v8 = vshrl.u32 %v1233_v39, 16  ;;  %v1273_v44 = vshrl.u32 %v1234_v40, 16 }
 0x170   : > { %v1235_v26 = vld [vmem:[#allocation3 + $0x14] sm:$0xf]  ;;  %v1262_v45 = vrot.slane %v1260_v36, 7  ;;  %v1276_v46 = vshll.u32 %v1234_v40, 16  ;;  %v1236_v43 = vld [vmem:[#allocation3 + $0x18] sm:$0x8] }
 0x171   : > { %v1282_v47 = vshrl.u32 %v1235_v26, 16  ;;  %v1285_v49 = vshll.u32 %v1235_v26, 16  ;;  %v1256_v50 = vor.u32 %v1254_v25, %v1253_v42  ;;  %v1258_v51 = vrot.slane %v1253_v42, 4  ;;  %v1237_v54 = vld [vmem:[#allocation3 + $0x1c] sm:$0xf] }
 0x172   : > { %v2876_v52 = vrot.slane %v1268_v8, 11  ;;  %v1275_v53 = vrot.slane %v1273_v44, 7  ;;  %v1265_v58 = vor.u32 %v1263_v38, %v1262_v45  ;;  %v1290_v59 = vshrl.u32 %v1236_v43, 16  ;;  %v1238_v48 = vld [vmem:[#allocation3 + $0x20] sm:$0xf] }
 0x173   : > { %v1284_v55 = vrot.slane %v1282_v47, 7  ;;  %v1295_v57 = vshrl.u32 %v1237_v54, 16  ;;  %v1257_v61 = vsel %vm3735_vm5, %v2875_v41, %v1256_v50  ;;  %v1298_v1 = vshll.u32 %v1237_v54, 16  ;;  %v1239_v2 = vld [vmem:[#allocation3 + $0x24] sm:$0x8] }
 0x174   : > { %v1278_v63 = vor.u32 %v1276_v46, %v1275_v53  ;;  %v1280_v0 = vrot.slane %v1275_v53, 4  ;;  %v1240_v4 = vld [vmem:[#allocation3 + $0x28] sm:$0xf]  ;;  %1341 = vst [vmem:[#allocation4 + $0x4] sm:$0xf] %v1257_v61  ;;  %v1266_v5 = vsel %vm3735_vm5, %v1258_v51, %v1265_v58  ;;  %v2877_v7 = vrot.slane %v1290_v59, 11 }
 0x175   : > { %v1287_v6 = vor.u32 %v1285_v49, %v1284_v55  ;;  %v1297_v9 = vrot.slane %v1295_v57, 7  ;;  %v1241_v10 = vld [vmem:[#allocation3 + $0x2c] sm:$0xf]  ;;  %1342 = vst [vmem:[#allocation4 + $0x10] sm:$0xf] %v1266_v5  ;;  %v1304_v12 = vshrl.u32 %v1238_v48, 16 }
 0x176   : > { %v1279_v11 = vsel %vm3735_vm5, %v2876_v52, %v1278_v63  ;;  %v1307_v56 = vshll.u32 %v1238_v48, 16  ;;  %v1312_v62 = vshrl.u32 %v1239_v2, 16  ;;  %v1317_v15 = vshrl.u32 %v1240_v4, 16 }
 0x177   : > { %1343 = vst [vmem:[#allocation4 + $0x1c] sm:$0xf] %v1279_v11  ;;  %v1288_v60 = vsel %vm3735_vm5, %v1280_v0, %v1287_v6  ;;  %v1300_v14 = vor.u32 %v1298_v1, %v1297_v9  ;;  %v1302_v16 = vrot.slane %v1297_v9, 4  ;;  %v1306_v19 = vrot.slane %v1304_v12, 7 }
 0x178   : > { %1344 = vst [vmem:[#allocation4 + $0x28] sm:$0xf] %v1288_v60  ;;  %v1320_v20 = vshll.u32 %v1240_v4, 16  ;;  %v1326_v21 = vshrl.u32 %v1241_v10, 16  ;;  %v2878_v30 = vrot.slane %v1312_v62, 11  ;;  %v1319_v3 = vrot.slane %v1317_v15, 7 }
 0x179   : > { %v1301_v24 = vsel %vm3735_vm5, %v2877_v7, %v1300_v14  ;;  %v1329_v31 = vshll.u32 %v1241_v10, 16  ;;  %v1309_v32 = vor.u32 %v1307_v56, %v1306_v19 }
 0x17a   : > { %1345 = vst [vmem:[#allocation4 + $0x34] sm:$0xf] %v1301_v24  ;;  %v1328_v13 = vrot.slane %v1326_v21, 7  ;;  %v1322_v25 = vor.u32 %v1320_v20, %v1319_v3  ;;  %v1324_v33 = vrot.slane %v1319_v3, 4 }
 0x17b   : > { %v1310_v35 = vsel %vm3735_vm5, %v1302_v16, %v1309_v32 }
 0x17c   : > { %v1331_v36 = vor.u32 %v1329_v31, %v1328_v13  ;;  %1346 = vst [vmem:[#allocation4 + $0x40] sm:$0xf] %v1310_v35  ;;  %v1323_v38 = vsel %vm3735_vm5, %v2878_v30, %v1322_v25 }
 0x17d   : > { %1347 = vst [vmem:[#allocation4 + $0x4c] sm:$0xf] %v1323_v38 }
 0x17e   : > { %v1332_v39 = vsel %vm3735_vm5, %v1324_v33, %v1331_v36 }
 0x17f   : > { %1348 = vst [vmem:[#allocation4 + $0x58] sm:$0xf] %v1332_v39 }
 0x180 PF: > { %p2879_p12 = scmp.ne.s32.totalorder %s3523_s26, 2 }
 0x182   : > { %1352 = sbr.rel (%p2879_p12) target bundleno = 414 (0x19e), region = 88 }
 0x187   : > { %v1353_v40 = vld [vmem:[#allocation3] sm:$0xc]  ;;  %v1354_v41 = vld [vmem:[#allocation3 + $0x4] sm:$0xf]  ;;  %vm1377_vm6 = vcmask 1041408   ;;  %vm1378_vm7 = vcmask 1045508  }
 0x188   : > { %vm3756_vm8 = vmor %vm1377_vm6, %vm1378_vm7  ;;  %v2880_v8 = vrot.slane %v1353_v40, 10  ;;  %v1382_v44 = vrot.slane %v1354_v41, 6  ;;  %v1355_v26 = vld [vmem:[#allocation3 + $0x8] sm:$0x3]  ;;  %v1356_v45 = vld [vmem:[#allocation3 + $0xc] sm:$0xc] }
 0x189   : > { %v1385_v46 = vrot.slane %v1355_v26, 6  ;;  %v1357_v37 = vld [vmem:[#allocation3 + $0x10] sm:$0xf]  ;;  %v2881_v47 = vrot.slane %v1356_v45, 10  ;;  %v1358_v49 = vld [vmem:[#allocation3 + $0x14] sm:$0x3] }
 0x18a   : > { %v1383_v43 = vsel %vm3756_vm8, %v2880_v8, %v1382_v44  ;;  %v1384_v50 = vrot.slane %v1382_v44, 4  ;;  %v1389_v51 = vrot.slane %v1357_v37, 6  ;;  %v1392_v52 = vrot.slane %v1358_v49, 6  ;;  %v1359_v53 = vld [vmem:[#allocation3 + $0x18] sm:$0xc] }
 0x18b   : > { %1416 = vst [vmem:[#allocation4] sm:$0xf] %v1383_v43  ;;  %v1360_v54 = vld [vmem:[#allocation3 + $0x1c] sm:$0xf]  ;;  %v2882_v58 = vrot.slane %v1359_v53, 10  ;;  %vm1448_vm9 = vcmask 1040384  }
 0x18c   : > { %v1361_v55 = vld [vmem:[#allocation3 + $0x20] sm:$0x3]  ;;  %v1386_v59 = vsel %vm3756_vm8, %v1384_v50, %v1385_v46  ;;  %v1390_v57 = vsel %vm3756_vm8, %v2881_v47, %v1389_v51  ;;  %v1391_v48 = vrot.slane %v1389_v51, 4  ;;  %v1396_v61 = vrot.slane %v1360_v54, 6  ;;  %v1362_v63 = vld [vmem:[#allocation3 + $0x24] sm:$0xc] }
 0x18d   : > { %v1363_v0 = vld [vmem:[#allocation3 + $0x28] sm:$0xf]  ;;  %1417 = vst [vmem:[#allocation4 + $0xc] sm:$0xf] %v1386_v59  ;;  %1418 = vst [vmem:[#allocation4 + $0x18] sm:$0xf] %v1390_v57 }
 0x18e   : > { %v1399_v1 = vrot.slane %v1361_v55, 6  ;;  %v2883_v2 = vrot.slane %v1362_v63, 10  ;;  %v1403_v4 = vrot.slane %v1363_v0, 6  ;;  %v1364_v5 = vld [vmem:[#allocation3 + $0x2c] sm:$0x3]  ;;  %vm1449_vm10 = vcmask 1044484  }
 0x18f   : > { %v1393_v6 = vsel %vm3756_vm8, %v1391_v48, %v1392_v52  ;;  %v1397_v7 = vsel %vm3756_vm8, %v2882_v58, %v1396_v61  ;;  %v1398_v9 = vrot.slane %v1396_v61, 4  ;;  %v1406_v10 = vrot.slane %v1364_v5, 6  ;;  %v1424_v11 = vld [vmem:[#allocation3] sm:$0x8]  ;;  %v1425_v12 = vld [vmem:[#allocation3 + $0x4] sm:$0xf]  ;;  %vm3771_vm11 = vmor %vm1448_vm9, %vm1449_vm10 }
 0x190   : > { %1419 = vst [vmem:[#allocation4 + $0x24] sm:$0xf] %v1393_v6  ;;  %1420 = vst [vmem:[#allocation4 + $0x30] sm:$0xf] %v1397_v7  ;;  %v1404_v62 = vsel %vm3756_vm8, %v2883_v2, %v1403_v4  ;;  %v1405_v60 = vrot.slane %v1403_v4, 4  ;;  %v2884_v14 = vrot.slane %v1424_v11, 11 }
 0x191   : > { %v1453_v15 = vrot.slane %v1425_v12, 7  ;;  %v1426_v16 = vld [vmem:[#allocation3 + $0x8] sm:$0x7]  ;;  %v1400_v19 = vsel %vm3756_vm8, %v1398_v9, %v1399_v1  ;;  %1422 = vst [vmem:[#allocation4 + $0x48] sm:$0xf] %v1404_v62 }
 0x192   : > { %v1456_v20 = vrot.slane %v1426_v16, 7  ;;  %v1427_v21 = vld [vmem:[#allocation3 + $0xc] sm:$0x8]  ;;  %v1428_v24 = vld [vmem:[#allocation3 + $0x10] sm:$0xf]  ;;  %v1407_v30 = vsel %vm3756_vm8, %v1405_v60, %v1406_v10 }
 0x193   : > { %1421 = vst [vmem:[#allocation4 + $0x3c] sm:$0xf] %v1400_v19  ;;  %v1454_v3 = vsel %vm3771_vm11, %v2884_v14, %v1453_v15  ;;  %v1455_v31 = vrot.slane %v1453_v15, 4  ;;  %v2885_v32 = vrot.slane %v1427_v21, 11  ;;  %v1429_v13 = vld [vmem:[#allocation3 + $0x14] sm:$0x7] }
 0x194   : > { %v1430_v25 = vld [vmem:[#allocation3 + $0x18] sm:$0x8]  ;;  %1423 = vst [vmem:[#allocation4 + $0x54] sm:$0xf] %v1407_v30  ;;  %1487 = vst [vmem:[#allocation4 + $0x4] sm:$0xf] %v1454_v3 }
 0x195   : > { %v1460_v33 = vrot.slane %v1428_v24, 7  ;;  %v1463_v35 = vrot.slane %v1429_v13, 7  ;;  %v1431_v36 = vld [vmem:[#allocation3 + $0x1c] sm:$0xf]  ;;  %v2886_v38 = vrot.slane %v1430_v25, 11  ;;  %v1457_v39 = vsel %vm3771_vm11, %v1455_v31, %v1456_v20 }
 0x196   : > { %v1467_v40 = vrot.slane %v1431_v36, 7  ;;  %v1432_v41 = vld [vmem:[#allocation3 + $0x20] sm:$0x7]  ;;  %v1433_v42 = vld [vmem:[#allocation3 + $0x24] sm:$0x8] }
 0x197   : > { %1488 = vst [vmem:[#allocation4 + $0x10] sm:$0xf] %v1457_v39  ;;  %v1461_v8 = vsel %vm3771_vm11, %v2885_v32, %v1460_v33  ;;  %v1462_v44 = vrot.slane %v1460_v33, 4  ;;  %v1470_v26 = vrot.slane %v1432_v41, 7  ;;  %v1434_v45 = vld [vmem:[#allocation3 + $0x28] sm:$0xf] }
 0x198   : > { %v2887_v46 = vrot.slane %v1433_v42, 11  ;;  %1489 = vst [vmem:[#allocation4 + $0x1c] sm:$0xf] %v1461_v8  ;;  %v1468_v37 = vsel %vm3771_vm11, %v2886_v38, %v1467_v40  ;;  %v1469_v47 = vrot.slane %v1467_v40, 4  ;;  %v1474_v49 = vrot.slane %v1434_v45, 7 }
 0x199   : > { %v1435_v43 = vld [vmem:[#allocation3 + $0x2c] sm:$0x7]  ;;  %v1464_v50 = vsel %vm3771_vm11, %v1462_v44, %v1463_v35  ;;  %1491 = vst [vmem:[#allocation4 + $0x34] sm:$0xf] %v1468_v37 }
 0x19a   : > { %v1477_v51 = vrot.slane %v1435_v43, 7  ;;  %1490 = vst [vmem:[#allocation4 + $0x28] sm:$0xf] %v1464_v50  ;;  %v1471_v52 = vsel %vm3771_vm11, %v1469_v47, %v1470_v26  ;;  %v1475_v53 = vsel %vm3771_vm11, %v2887_v46, %v1474_v49  ;;  %v1476_v54 = vrot.slane %v1474_v49, 4 }
 0x19b   : > { %1492 = vst [vmem:[#allocation4 + $0x40] sm:$0xf] %v1471_v52  ;;  %1493 = vst [vmem:[#allocation4 + $0x4c] sm:$0xf] %v1475_v53 }
 0x19c   : > { %v1478_v58 = vsel %vm3771_vm11, %v1476_v54, %v1477_v51 }
 0x19d   : > { %1494 = vst [vmem:[#allocation4 + $0x58] sm:$0xf] %v1478_v58 }
 0x19e PF: > { %p2888_p13 = scmp.ne.s32.totalorder %s3523_s26, 4 }
 0x1a0   : > { %1498 = sbr.rel (%p2888_p13) target bundleno = 439 (0x1b7), region = 92 }
 0x1a5   : > { %v1499_v55 = vld [vmem:[#allocation3] sm:$0xf]  ;;  %v1500_v59 = vld [vmem:[#allocation3 + $0x4] sm:$0xf]  ;;  %v1501_v57 = vld [vmem:[#allocation3 + $0xc] sm:$0xf] }
 0x1a6   : > { %1507 = vst [vmem:[#allocation4] sm:$0xf] %v1499_v55  ;;  %1508 = vst [vmem:[#allocation4 + $0xc] sm:$0xf] %v1500_v59  ;;  %v1502_v48 = vld [vmem:[#allocation3 + $0x10] sm:$0xf] }
 0x1a7   : > { %1509 = vst [vmem:[#allocation4 + $0x18] sm:$0xf] %v1501_v57  ;;  %v1503_v61 = vld [vmem:[#allocation3 + $0x18] sm:$0xf]  ;;  %v1504_v63 = vld [vmem:[#allocation3 + $0x1c] sm:$0xf] }
 0x1a8   : > { %1510 = vst [vmem:[#allocation4 + $0x24] sm:$0xf] %v1502_v48  ;;  %1511 = vst [vmem:[#allocation4 + $0x30] sm:$0xf] %v1503_v61  ;;  %v1505_v0 = vld [vmem:[#allocation3 + $0x24] sm:$0xf] }
 0x1a9   : > { %1512 = vst [vmem:[#allocation4 + $0x3c] sm:$0xf] %v1504_v63  ;;  %v1506_v1 = vld [vmem:[#allocation3 + $0x28] sm:$0xf]  ;;  %v1515_v2 = vld [vmem:[#allocation3] sm:$0xc] }
 0x1aa   : > { %1513 = vst [vmem:[#allocation4 + $0x48] sm:$0xf] %v1505_v0  ;;  %1514 = vst [vmem:[#allocation4 + $0x54] sm:$0xf] %v1506_v1  ;;  %v1516_v4 = vld [vmem:[#allocation3 + $0x4] sm:$0xf] }
 0x1ab   : > { %vm1539_vm12 = vcmask 1041408   ;;  %vm1540_vm13 = vcmask 1045508   ;;  %v2889_v5 = vrot.slane %v1515_v2, 10  ;;  %v1544_v7 = vrot.slane %v1516_v4, 6  ;;  %v1517_v9 = vld [vmem:[#allocation3 + $0x8] sm:$0x3] }
 0x1ac   : > { %vm3798_vm14 = vmor %vm1539_vm12, %vm1540_vm13  ;;  %v1518_v10 = vld [vmem:[#allocation3 + $0xc] sm:$0xc]  ;;  %v1547_v11 = vrot.slane %v1517_v9, 6  ;;  %v1519_v12 = vld [vmem:[#allocation3 + $0x10] sm:$0xf] }
 0x1ad   : > { %v2890_v56 = vrot.slane %v1518_v10, 10  ;;  %v1520_v62 = vld [vmem:[#allocation3 + $0x14] sm:$0x3]  ;;  %v1545_v60 = vsel %vm3798_vm14, %v2889_v5, %v1544_v7  ;;  %v1546_v14 = vrot.slane %v1544_v7, 4  ;;  %v1551_v15 = vrot.slane %v1519_v12, 6 }
 0x1ae   : > { %v1554_v16 = vrot.slane %v1520_v62, 6  ;;  %v1521_v19 = vld [vmem:[#allocation3 + $0x18] sm:$0xc]  ;;  %1578 = vst [vmem:[#allocation4 + $0x4] sm:$0xf] %v1545_v60 }
 0x1af   : > { %v1522_v20 = vld [vmem:[#allocation3 + $0x1c] sm:$0xf]  ;;  %v2891_v21 = vrot.slane %v1521_v19, 10  ;;  %v1523_v24 = vld [vmem:[#allocation3 + $0x20] sm:$0x3]  ;;  %v1548_v30 = vsel %vm3798_vm14, %v1546_v14, %v1547_v11  ;;  %v1552_v3 = vsel %vm3798_vm14, %v2890_v56, %v1551_v15  ;;  %v1553_v31 = vrot.slane %v1551_v15, 4 }
 0x1b0   : > { %v1558_v32 = vrot.slane %v1522_v20, 6  ;;  %v1524_v13 = vld [vmem:[#allocation3 + $0x24] sm:$0xc]  ;;  %v1525_v25 = vld [vmem:[#allocation3 + $0x28] sm:$0xf]  ;;  %v1561_v33 = vrot.slane %v1523_v24, 6 }
 0x1b1   : > { %1579 = vst [vmem:[#allocation4 + $0x10] sm:$0xf] %v1548_v30  ;;  %1580 = vst [vmem:[#allocation4 + $0x1c] sm:$0xf] %v1552_v3  ;;  %v2892_v35 = vrot.slane %v1524_v13, 10  ;;  %v1565_v36 = vrot.slane %v1525_v25, 6  ;;  %v1555_v39 = vsel %vm3798_vm14, %v1553_v31, %v1554_v16 }
 0x1b2   : > { %v1526_v38 = vld [vmem:[#allocation3 + $0x2c] sm:$0x3]  ;;  %v1559_v40 = vsel %vm3798_vm14, %v2891_v21, %v1558_v32  ;;  %v1560_v41 = vrot.slane %v1558_v32, 4  ;;  %1581 = vst [vmem:[#allocation4 + $0x28] sm:$0xf] %v1555_v39 }
 0x1b3   : > { %v1568_v42 = vrot.slane %v1526_v38, 6  ;;  %1582 = vst [vmem:[#allocation4 + $0x34] sm:$0xf] %v1559_v40  ;;  %v1566_v8 = vsel %vm3798_vm14, %v2892_v35, %v1565_v36  ;;  %v1567_v44 = vrot.slane %v1565_v36, 4 }
 0x1b4   : > { %v1562_v26 = vsel %vm3798_vm14, %v1560_v41, %v1561_v33  ;;  %1584 = vst [vmem:[#allocation4 + $0x4c] sm:$0xf] %v1566_v8 }
 0x1b5   : > { %1583 = vst [vmem:[#allocation4 + $0x40] sm:$0xf] %v1562_v26  ;;  %v1569_v45 = vsel %vm3798_vm14, %v1567_v44, %v1568_v42 }
 0x1b6   : > { %1585 = vst [vmem:[#allocation4 + $0x58] sm:$0xf] %v1569_v45 }
 0x1b7 PF: > { %v3274_v46 = vld [vmem:[%s3567_s4 + $0x78] sm:$0xff]   ;;  %v3277_v49 = vld [vmem:[%s3567_s4 + $0x70] sm:$0xff]   ;;  %v3280_v51 = vld [vmem:[%s3567_s4 + $0x68] sm:$0xff]   ;;  %p2939_p0 = scmp.ne.s32.totalorder %s3406_s23, 5 }
 0x1b8   : > { %v3275_v37 = vld [vmem:[%s3567_s4 + $0x38] sm:$0xff]   ;;  %3015 = vmatprep.subr.bf16.mxu1 %v3274_v46  ;;  %v3278_v43 = vld [vmem:[%s3567_s4 + $0x30] sm:$0xff]   ;;  %v3281_v52 = vld [vmem:[%s3567_s4 + $0x28] sm:$0xff]   ;;  %s4101_s12 = sld [smem:[#allocation13_spill]] (!%p2939_p0) }
 0x1b9   : > { %v3276_v47 = vld [vmem:[%s3567_s4 + $0xb8] sm:$0xff]   ;;  %3016 = vmatpush3.bf16.msra.mxu1 %v3275_v37  ;;  %v3279_v50 = vld [vmem:[%s3567_s4 + $0xb0] sm:$0xff]   ;;  %v3282_v53 = vld [vmem:[%s3567_s4 + $0xa8] sm:$0xff]   ;;  %s4102_s29 = sld [smem:[#allocation12_spill]] (!%p2939_p0) }
 0x1ba   : > { %3127 = vmatprep.subr.bf16.mxu0 %v3276_v47  ;;  %3017 = vmatprep.subr.bf16.mxu1 %v3277_v49  ;;  %v3283_v54 = vld [vmem:[%s3567_s4 + $0x60] sm:$0xff]   ;;  %v3286_v59 = vld [vmem:[%s3567_s4 + $0x58] sm:$0xff]   ;;  %v3289_v61 = vld [vmem:[%s3567_s4 + $0x50] sm:$0xff]   ;;  %s4103_s15 = sld [smem:[#allocation14_spill]] (!%p2939_p0) }
 0x1bb   : > { %3128 = vmatpush3.bf16.msra.mxu0 %v3276_v47  ;;  %v3284_v58 = vld [vmem:[%s3567_s4 + $0x20] sm:$0xff]   ;;  %v3288_v57 = vld [vmem:[%s3567_s4 + $0x98] sm:$0xff]   ;;  %v3291_v63 = vld [vmem:[%s3567_s4 + $0x90] sm:$0xff]  }
 0x1bc   : > { %3129 = vmatprep.subr.bf16.mxu0 %v3279_v50  ;;  %v3285_v55 = vld [vmem:[%s3567_s4 + $0xa0] sm:$0xff]   ;;  %v3287_v48 = vld [vmem:[%s3567_s4 + $0x18] sm:$0xff]   ;;  %v3290_v0 = vld [vmem:[%s3567_s4 + $0x10] sm:$0xff]  }
 0x1bd   : > { %3018 = vmatpush3.bf16.msra.mxu1 %v3278_v43  ;;  %v3292_v1 = vld [vmem:[%s3567_s4 + $0x48] sm:$0xff]   ;;  %v3295_v5 = vld [vmem:[%s3567_s4 + $0x40] sm:$0xff]   ;;  %v3298_v11 = vld [vmem:[#allocation4] ss:$12 sps:$4 sm:$0xff]  }
 0x1be   : > { %3019 = vmatprep.subr.bf16.mxu1 %v3280_v51  ;;  %v3293_v2 = vld [vmem:[%s3567_s4 + $0x8] sm:$0xff]   ;;  %v3297_v6 = vld [vmem:[%s3567_s4 + $0x80] sm:$0xff]   ;;  %v3302_v56 = vld [vmem:[#allocation4 + $0x20] ss:$12 sps:$4 sm:$0xff]  }
 0x1bf   : > { %3130 = vmatpush3.bf16.msra.mxu0 %v3279_v50  ;;  %v3294_v4 = vld [vmem:[%s3567_s4 + $0x88] sm:$0xff]   ;;  %v3300_v7 = vld [vmem:[#allocation4 + $0x4] ss:$12 sps:$4 sm:$0xff]   ;;  %v3301_v9 = vld [vmem:[#allocation4 + $0x8] ss:$12 sps:$4 sm:$0xff]  }
 0x1c0   : > { %3131 = vmatprep.subr.bf16.mxu0 %v3282_v53  ;;  %v3296_v10 = vld [vmem:[%s3567_s4] sm:$0xff]   ;;  %1890 = vmatprep.mubr.bf16.mxu1 %v3300_v7  ;;  %v3303_v12 = vld [vmem:[#allocation4 + $0x1c] ss:$12 sps:$4 sm:$0xff]   ;;  %v3309_v62 = vld [vmem:[#allocation4 + $0x38] ss:$12 sps:$4 sm:$0xff]  }
 0x1c1   : > { %3020 = vmatpush3.bf16.msra.mxu1 %v3281_v52  ;;  %3143 = vmatprep.mubr.bf16.mxu0 %v3301_v9  ;;  %v3305_v60 = vld [vmem:[#allocation4 + $0x18] ss:$12 sps:$4 sm:$0xff]   ;;  %v3306_v14 = vld [vmem:[#allocation4 + $0x34] ss:$12 sps:$4 sm:$0xff]   ;;  %v3310_v15 = vld [vmem:[#allocation4 + $0x50] ss:$12 sps:$4 sm:$0xff]  }
 0x1c2   : > { %3021 = vmatprep.subr.bf16.mxu1 %v3283_v54  ;;  %v3308_v16 = vld [vmem:[#allocation4 + $0x30] ss:$12 sps:$4 sm:$0xff]   ;;  %v3311_v19 = vld [vmem:[#allocation4 + $0x4c] ss:$12 sps:$4 sm:$0xff]   ;;  %v3313_v20 = vld [vmem:[#allocation4 + $0x48] ss:$12 sps:$4 sm:$0xff]  }
 0x1c3   : > { %3132 = vmatpush3.bf16.msra.mxu0 %v3282_v53  ;;  %v3314_v21 = vld [vmem:[%s3562_s22 + $0x38] sm:$0xff]   ;;  %v3315_v24 = vld [vmem:[%s3562_s22 + $0x30] sm:$0xff]   ;;  %v3316_v30 = vld [vmem:[%s3562_s22 + $0x28] sm:$0xff]  }
 0x1c4   : > { %3133 = vmatprep.subr.bf16.mxu0 %v3285_v55  ;;  %v3317_v3 = vld [vmem:[%s3562_s22 + $0x20] sm:$0xff]   ;;  %v3318_v31 = vld [vmem:[%s3562_s22 + $0x18] sm:$0xff]   ;;  %v3319_v32 = vld [vmem:[%s3562_s22 + $0x10] sm:$0xff]  }
 0x1c5   : > { %3022 = vmatpush3.bf16.msra.mxu1 %v3284_v58  ;;  %v3320_v13 = vld [vmem:[%s3562_s22 + $0x8] sm:$0xff]   ;;  %v3321_v25 = vld [vmem:[%s3562_s22] sm:$0xff]  }
 0x1c6   : > { %3023 = vmatprep.subr.bf16.mxu1 %v3286_v59 }
 0x1c7   : > { %3134 = vmatpush3.bf16.msra.mxu0 %v3285_v55 }
 0x1c8   : > { %3135 = vmatprep.subr.bf16.mxu0 %v3288_v57 }
 0x1c9   : > { %3024 = vmatpush3.bf16.msra.mxu1 %v3287_v48 }
 0x1ca   : > { %3025 = vmatprep.subr.bf16.mxu1 %v3289_v61 }
 0x1cb   : > { %3136 = vmatpush3.bf16.msra.mxu0 %v3288_v57 }
 0x1cc   : > { %3137 = vmatprep.subr.bf16.mxu0 %v3291_v63 }
 0x1cd   : > { %3026 = vmatpush3.bf16.msra.mxu1 %v3290_v0 }
 0x1ce   : > { %3027 = vmatprep.subr.bf16.mxu1 %v3292_v1 }
 0x1cf   : > { %3138 = vmatpush3.bf16.msra.mxu0 %v3291_v63 }
 0x1d0   : > { %3139 = vmatprep.subr.bf16.mxu0 %v3294_v4 }
 0x1d1   : > { %3028 = vmatpush3.bf16.msra.mxu1 %v3293_v2 }
 0x1d2   : > { %3029 = vmatprep.subr.bf16.mxu1 %v3295_v5 }
 0x1d3   : > { %3140 = vmatpush3.bf16.msra.mxu0 %v3294_v4 }
 0x1d4   : > { %3141 = vmatprep.subr.bf16.mxu0 %v3297_v6 }
 0x1d5   : > { %3030 = vmatpush3.bf16.msra.mxu1 %v3296_v10 }
 0x1d6   : > { %3151 = vmatprep.subr.bf16.mxu1 %v3314_v21 }
 0x1d7   : > { %3142 = vmatpush3.bf16.msra.mxu0 %v3297_v6 }
 0x1d8   : > { %1891 = vmatmul.mubr.bf16.vlgmr.msra.gmra.mxu1 %v3298_v11 }
 0x1d9   : > { %1898 = vmatprep.mubr.bf16.mxu1 %v3303_v12  ;;  %3152 = vmatpush3.bf16.msra.mxu1 %v3314_v21 }
 0x1da   : > { %3144 = vmatmul.mubr.bf16.vlgmr.msra.gmra.mxu0 %v3302_v56  ;;  %3153 = vmatprep.subr.bf16.mxu1 %v3315_v24 }
 0x1db   : > { %3147 = vmatprep.mubr.bf16.mxu0 %v3309_v62 }
 0x1dd   : > { %3154 = vmatpush3.bf16.msra.mxu1 %v3315_v24 }
 0x1de   : > { %3155 = vmatprep.subr.bf16.mxu1 %v3316_v30 }
 0x1e0   : > { %1899 = vmatmul.mubr.bf16.gmra.mxu1 %v3305_v60 }
 0x1e1   : > { %1906 = vmatprep.mubr.bf16.mxu1 %v3306_v14  ;;  %3156 = vmatpush3.bf16.msra.mxu1 %v3316_v30 }
 0x1e2   : > { %3148 = vmatmul.mubr.bf16.gmra.mxu0 %v3310_v15  ;;  %3157 = vmatprep.subr.bf16.mxu1 %v3317_v3 }
 0x1e5   : > { %3158 = vmatpush3.bf16.msra.mxu1 %v3317_v3 }
 0x1e6   : > { %3159 = vmatprep.subr.bf16.mxu1 %v3318_v31 }
 0x1e8   : > { %1907 = vmatmul.mubr.bf16.gmra.mxu1 %v3308_v16 }
 0x1e9   : > { %1914 = vmatprep.mubr.bf16.mxu1 %v3311_v19  ;;  %3160 = vmatpush3.bf16.msra.mxu1 %v3318_v31 }
 0x1ea   : > { %3161 = vmatprep.subr.bf16.mxu1 %v3319_v32 }
 0x1ed   : > { %3162 = vmatpush3.bf16.msra.mxu1 %v3319_v32 }
 0x1ee   : > { %3163 = vmatprep.subr.bf16.mxu1 %v3320_v13 }
 0x1f0   : > { %1915 = vmatmul.mubr.bf16.gmra.mxu1 %v3313_v20 }
 0x1f1   : > { %3164 = vmatpush3.bf16.msra.mxu1 %v3320_v13 }
 0x1f2   : > { %3165 = vmatprep.subr.bf16.mxu1 %v3321_v25 }
 0x1f5   : > { %3166 = vmatpush3.bf16.msra.mxu1 %v3321_v25 }
 0x298   : > { %v3031_v33 = vpop.f32.mrf.mxu1 }
 0x29a   : > { %v3032_v35 = vpop.f32.mrf.mxu1  ;;  %v3145_v36 = vpop.f32.mrf.mxu0 }
 0x29b   : > { %v3033_v38 = vadd.f32 %v3032_v35, %v3031_v33 }
 0x29c   : > { %v3034_v39 = vpop.f32.mrf.mxu1  ;;  %v1957_v40 = vpop.f32.mrf.mxu0 }
 0x29d   : > { %v3850_v8 = vadd.f32 %v3033_v38, %v1957_v40 }
 0x29e   : > { %v3035_v41 = vpop.f32.mrf.mxu1  ;;  %v3146_v42 = vpop.f32.mrf.mxu0 }
 0x29f   : > { %v3036_v44 = vadd.f32 %v3035_v41, %v3034_v39  ;;  %v2022_v47 = vmul.f32 %v3850_v8, %v3850_v8 }
 0x2a0   : > { %v3037_v26 = vpop.f32.mrf.mxu1  ;;  %v1960_v45 = vpop.f32.mrf.mxu0 }
 0x2a1   : > { %v3852_v46 = vadd.f32 %v3036_v44, %v1960_v45 }
 0x2a2   : > { %v3038_v37 = vpop.f32.mrf.mxu1  ;;  %v3860_v51 = vpop.f32.mrf.mxu0 }
 0x2a3   : > { %v1990_v49 = vadd.f32 %v3852_v46, %v3850_v8  ;;  %v2023_v43 = vmul.f32 %v3852_v46, %v3852_v46  ;;  %v3039_v50 = vadd.f32 %v3038_v37, %v3037_v26 }
 0x2a4   : > { %v3040_v52 = vpop.f32.mrf.mxu1  ;;  %v1973_v61 = vpop.f32.mrf.mxu0 }
 0x2a5   : > { %v1991_v53 = vrot.slane %v1990_v49, 4  ;;  %v2030_v54 = vadd.f32 %v2023_v43, %v2022_v47  ;;  %v3862_v58 = vadd.f32 %v3145_v36, %v3039_v50 }
 0x2a6   : > { %v3041_v55 = vpop.f32.mrf.mxu1  ;;  %v3150_v11 = vpop.f32.mrf.mxu0 }
 0x2a7   : > { %v1992_v59 = vadd.f32 %v1991_v53, %v1990_v49  ;;  %v2031_v57 = vrot.slane %v2030_v54, 4  ;;  %v3042_v48 = vadd.f32 %v3041_v55, %v3040_v52  ;;  %v2024_v4 = vmul.f32 %v3862_v58, %v3862_v58 }
 0x2a8   : > { %v3043_v63 = vpop.f32.mrf.mxu1  ;;  %v1976_v30 = vpop.f32.mrf.mxu0 }
 0x2a9   : > { %v1993_v0 = vrot.slane %v1992_v59, 2  ;;  %v2032_v1 = vadd.f32 %v2031_v57, %v2030_v54  ;;  %v3864_v2 = vadd.f32 %v3146_v42, %v3042_v48 }
 0x2aa   : > { %v3044_v5 = vpop.f32.mrf.mxu1 }
 0x2ab   : > { %v1994_v6 = vadd.f32 %v1993_v0, %v1992_v59  ;;  %v2033_v7 = vrot.slane %v2032_v1, 2  ;;  %v1997_v9 = vadd.f32 %v3864_v2, %v3862_v58  ;;  %v2025_v10 = vmul.f32 %v3864_v2, %v3864_v2 }
 0x2ac   : > { %v3045_v12 = vadd.f32 %v3044_v5, %v3043_v63  ;;  %v3046_v56 = vpop.f32.mrf.mxu1 }
 0x2ad   : > { %v1995_v62 = vrot.slane %v1994_v6, 1  ;;  %v2034_v60 = vadd.f32 %v2033_v7, %v2032_v1  ;;  %v1998_v14 = vrot.slane %v1997_v9, 4  ;;  %v2037_v15 = vadd.f32 %v2025_v10, %v2024_v4 }
 0x2ae   : > { %v3047_v16 = vpop.f32.mrf.mxu1  ;;  %v3872_v3 = vadd.f32 %v3045_v12, %v1973_v61 }
 0x2af   : > { %v1996_v19 = vadd.f32 %v1995_v62, %v1994_v6  ;;  %v2035_v20 = vrot.slane %v2034_v60, 1  ;;  %v1999_v21 = vadd.f32 %v1998_v14, %v1997_v9  ;;  %v2038_v24 = vrot.slane %v2037_v15, 4 }
 0x2b0   : > { %v3048_v31 = vadd.f32 %v3047_v16, %v3046_v56  ;;  %v3049_v32 = vpop.f32.mrf.mxu1  ;;  %v2026_v44 = vmul.f32 %v3872_v3, %v3872_v3 }
 0x2b1   : > { %v3874_v13 = vmul.f32 0.0625, %v1996_v19  ;;  %v2036_v25 = vadd.f32 %v2035_v20, %v2034_v60  ;;  %v2000_v33 = vrot.slane %v1999_v21, 2  ;;  %v2039_v35 = vadd.f32 %v2038_v24, %v2037_v15 }
 0x2b2   : > { %v3876_v36 = vadd.f32 %v3048_v31, %v1976_v30  ;;  %v3050_v38 = vpop.f32.mrf.mxu1 }
 0x2b3   : > { %v2058_v39 = vmul.f32 0.0625, %v2036_v25  ;;  %v2062_v40 = vmul.f32 %v3874_v13, %v3874_v13  ;;  %v2001_v41 = vadd.f32 %v2000_v33, %v1999_v21  ;;  %v2040_v42 = vrot.slane %v2039_v35, 2 }
 0x2b4   : > { %v2004_v26 = vadd.f32 %v3876_v36, %v3872_v3  ;;  %v2027_v45 = vmul.f32 %v3876_v36, %v3876_v36  ;;  %v3052_v37 = vpop.f32.mrf.mxu1  ;;  %v3051_v43 = vadd.f32 %v3050_v38, %v3049_v32 }
 0x2b5   : > { %v2066_v47 = vsub.f32 %v2058_v39, %v2062_v40  ;;  %v2002_v49 = vrot.slane %v2001_v41, 1  ;;  %v2041_v50 = vadd.f32 %v2040_v42, %v2039_v35 }
 0x2b6   : > { %v2005_v52 = vrot.slane %v2004_v26, 4  ;;  %v2044_v53 = vadd.f32 %v2027_v45, %v2026_v44  ;;  %v3053_v54 = vpop.f32.mrf.mxu1  ;;  %v3889_v4 = vadd.f32 %v3860_v51, %v3051_v43  ;;  %v2075_v45 = vsub.f32 %v3852_v46, %v3874_v13  ;;  %v2930_v46 = vld [vmem:[%s626_s13] ss:$0 sm:$0xff]  ;;  %s4104_s13 = sld [smem:[#allocation15_spill]] (!%p2939_p0) }
 0x2b7   : > { %v2070_v55 = vmax.f32 %v2066_v47, 0.0  ;;  %v2003_v59 = vadd.f32 %v2002_v49, %v2001_v41  ;;  %v3054_v57 = vadd.f32 %v3053_v54, %v3052_v37  ;;  %v2042_v48 = vrot.slane %v2041_v50, 1 }
 0x2b8   : > { %v2006_v61 = vadd.f32 %v2005_v52, %v2004_v26  ;;  %v2045_v63 = vrot.slane %v2044_v53, 4  ;;  %v2028_v14 = vmul.f32 %v3889_v4, %v3889_v4  ;;  %v2074_v49 = vsub.f32 %v3850_v8, %v3874_v13 }
 0x2b9   : > { %v2082_v0 = vadd.f32 1e-05, %v2070_v55  ;;  %v3886_v1 = vmul.f32 0.0625, %v2003_v59  ;;  %v3891_v5 = vadd.f32 %v3150_v11, %v3054_v57  ;;  %v2043_v6 = vadd.f32 %v2042_v48, %v2041_v50  ;;  %v2929_v50 = vld [vmem:[%s623_s16] ss:$0 sm:$0xff] }
 0x2ba   : > { %v2007_v7 = vrot.slane %v2006_v61, 2  ;;  %v2046_v9 = vadd.f32 %v2045_v63, %v2044_v53 }
 0x2bb   : > { %3322 = vrsqrt.f32 %v2082_v0  ;;  %v2063_v10 = vmul.f32 %v3886_v1, %v3886_v1  ;;  %v2059_v12 = vmul.f32 0.0625, %v2043_v6  ;;  %v2011_v60 = vadd.f32 %v3891_v5, %v3889_v4 }
 0x2bc   : > { %v2008_v56 = vadd.f32 %v2007_v7, %v2006_v61  ;;  %v2047_v62 = vrot.slane %v2046_v9, 2  ;;  %v2029_v51 = vmul.f32 %v3891_v5, %v3891_v5 }
 0x2bd   : > { %v2067_v11 = vsub.f32 %v2059_v12, %v2063_v10  ;;  %v2012_v19 = vrot.slane %v2011_v60, 4  ;;  %v2076_v12 = vsub.f32 %v3862_v58, %v3886_v1 }
 0x2be   : > { %v2009_v15 = vrot.slane %v2008_v56, 1  ;;  %v2048_v16 = vadd.f32 %v2047_v62, %v2046_v9  ;;  %v2051_v20 = vadd.f32 %v2029_v51, %v2028_v14 }
 0x2bf   : > { %v2071_v21 = vmax.f32 %v2067_v11, 0.0  ;;  %v2013_v31 = vadd.f32 %v2012_v19, %v2011_v60 }
 0x2c0   : > { %v2010_v24 = vadd.f32 %v2009_v15, %v2008_v56  ;;  %v2049_v30 = vrot.slane %v2048_v16, 1  ;;  %v2052_v32 = vrot.slane %v2051_v20, 4  ;;  %v2077_v56 = vsub.f32 %v3864_v2, %v3886_v1 }
 0x2c1   : > { %v2083_v25 = vadd.f32 1e-05, %v2071_v21  ;;  %v2014_v38 = vrot.slane %v2013_v31, 2 }
 0x2c2   : > { %v2020_v33 = vmul.f32 0.0625, %v2010_v24  ;;  %v2050_v35 = vadd.f32 %v2049_v30, %v2048_v16  ;;  %v2053_v39 = vadd.f32 %v2052_v32, %v2051_v20 }
 0x2c3   : > { %3324 = vrsqrt.f32 %v2083_v25  ;;  %v2015_v42 = vadd.f32 %v2014_v38, %v2013_v31 }
 0x2c4   : > { %v2060_v40 = vmul.f32 0.0625, %v2050_v35  ;;  %v2064_v41 = vmul.f32 %v2020_v33, %v2020_v33  ;;  %v2054_v44 = vrot.slane %v2053_v39, 2  ;;  %v2079_v31 = vsub.f32 %v3876_v36, %v2020_v33 }
 0x2c5   : > { %v2016_v37 = vrot.slane %v2015_v42, 1  ;;  %v2078_v32 = vsub.f32 %v3872_v3, %v2020_v33 }
 0x2c6   : > { %v2068_v26 = vsub.f32 %v2060_v40, %v2064_v41  ;;  %v2055_v47 = vadd.f32 %v2054_v44, %v2053_v39 }
 0x2c7   : > { %v2017_v54 = vadd.f32 %v2016_v37, %v2015_v42 }
 0x2c8   : > { %v3323_v43 = vpop.eup %3322  ;;  %v2072_v52 = vmax.f32 %v2068_v26, 0.0  ;;  %v2056_v55 = vrot.slane %v2055_v47, 1 }
 0x2c9   : > { %v2091_v53 = vmul.f32 %v3323_v43, %v2075_v45  ;;  %v2090_v59 = vmul.f32 %v3323_v43, %v2074_v49  ;;  %v2021_v48 = vmul.f32 0.0625, %v2017_v54 }
 0x2ca   : > { %v2084_v57 = vadd.f32 1e-05, %v2072_v52  ;;  %v2057_v61 = vadd.f32 %v2056_v55, %v2055_v47 }
 0x2cb   : > { %v2104_v8 = vmul.f32 %v2929_v50, %v2090_v59  ;;  %v2105_v13 = vmul.f32 %v2929_v50, %v2091_v53  ;;  %v2065_v0 = vmul.f32 %v2021_v48, %v2021_v48  ;;  %v2081_v26 = vsub.f32 %v3891_v5, %v2021_v48 }
 0x2cc   : > { %3326 = vrsqrt.f32 %v2084_v57  ;;  %v2061_v63 = vmul.f32 0.0625, %v2057_v61  ;;  %v2080_v45 = vsub.f32 %v3889_v4, %v2021_v48 }
 0x2cd   : > { %v2118_v6 = vadd.f32 %v2930_v46, %v2104_v8  ;;  %v2119_v7 = vadd.f32 %v2930_v46, %v2105_v13 }
 0x2ce   : > { %v2069_v9 = vsub.f32 %v2061_v63, %v2065_v0 }
 0x2cf   : > { %v2126_v10 = vmax.f32 %v2118_v6, 0.0  ;;  %v2127_v62 = vmax.f32 %v2119_v7, 0.0 }
 0x2d0   : > { %v3325_v60 = vpop.eup %3324  ;;  %v2073_v14 = vmax.f32 %v2069_v9, 0.0 }
 0x2d1   : > { %v2092_v51 = vmul.f32 %v3325_v60, %v2076_v12  ;;  %v2093_v11 = vmul.f32 %v3325_v60, %v2077_v56  ;;  %v2150_v15 = vpack.c.bf16 %v2127_v62, %v2126_v10 }
 0x2d2   : > { %v2085_v16 = vadd.f32 1e-05, %v2073_v14 }
 0x2d3   : > { %v2107_v19 = vmul.f32 %v2929_v50, %v2093_v11  ;;  %3167 = vmatprep.mubr.bf16.mxu1 %v2150_v15  ;;  %v2106_v20 = vmul.f32 %v2929_v50, %v2092_v51 }
 0x2d4   : > { %3328 = vrsqrt.f32 %v2085_v16 }
 0x2d5   : > { %v2121_v21 = vadd.f32 %v2930_v46, %v2107_v19  ;;  %v2120_v24 = vadd.f32 %v2930_v46, %v2106_v20 }
 0x2d7   : > { %v2129_v30 = vmax.f32 %v2121_v21, 0.0  ;;  %v2128_v58 = vmax.f32 %v2120_v24, 0.0 }
 0x2d9   : > { %v3327_v2 = vpop.eup %3326  ;;  %v2151_v25 = vpack.c.bf16 %v2129_v30, %v2128_v58 }
 0x2da   : > { %v2095_v1 = vmul.f32 %v3327_v2, %v2079_v31  ;;  %v2094_v35 = vmul.f32 %v3327_v2, %v2078_v32 }
 0x2db   : > { %3168 = vmatmul.mubr.bf16.vlgmr.msra.gmra.mxu1 %v2151_v25 }
 0x2dc   : > { %v2108_v38 = vmul.f32 %v2929_v50, %v2094_v35  ;;  %v2109_v39 = vmul.f32 %v2929_v50, %v2095_v1 }
 0x2de   : > { %v2122_v40 = vadd.f32 %v2930_v46, %v2108_v38  ;;  %v2123_v41 = vadd.f32 %v2930_v46, %v2109_v39 }
 0x2e0   : > { %v2130_v42 = vmax.f32 %v2122_v40, 0.0  ;;  %v2131_v44 = vmax.f32 %v2123_v41, 0.0 }
 0x2e1   : > { %v3329_v37 = vpop.eup %3328 }
 0x2e2   : > { %v2152_v36 = vpack.c.bf16 %v2131_v44, %v2130_v42  ;;  %v2097_v47 = vmul.f32 %v3329_v37, %v2081_v26  ;;  %v2096_v49 = vmul.f32 %v3329_v37, %v2080_v45 }
 0x2e4   : > { %3171 = vmatprep.mubr.bf16.mxu1 %v2152_v36  ;;  %v2110_v3 = vmul.f32 %v2929_v50, %v2096_v49  ;;  %v2111_v33 = vmul.f32 %v2929_v50, %v2097_v47 }
 0x2e6   : > { %v2124_v43 = vadd.f32 %v2930_v46, %v2110_v3  ;;  %v2125_v52 = vadd.f32 %v2930_v46, %v2111_v33 }
 0x2e8   : > { %v2132_v53 = vmax.f32 %v2124_v43, 0.0  ;;  %v2133_v54 = vmax.f32 %v2125_v52, 0.0 }
 0x2ea   : > { %v2153_v55 = vpack.c.bf16 %v2133_v54, %v2132_v53 }
 0x2ec   : > { %3172 = vmatmul.mubr.bf16.gmra.mxu1 %v2153_v55 }
 0x39b   : > { %v3169_v59 = vpop.f32.mrf.mxu1 }
 0x39c   : > { %v2269_v57 = vadd.f32 %v3169_v59, %v3596_v22 }
 0x39d   : > { %v2236_v61 = vpop.f32.mrf.mxu1 }
 0x39e   : > { %2277 = vst [vmem:[#allocation2 + $0x18] sm:$0xff] %v2269_v57  ;;  %v2267_v4 = vadd.f32 %v2236_v61, %v3586_v17 }
 0x39f   : > { %v3170_v5 = vpop.f32.mrf.mxu1 }
 0x3a0   : > { %2275 = vst [vmem:[#allocation2 + $0x30] sm:$0xff] %v2267_v4  ;;  %v2270_v48 = vadd.f32 %v3170_v5, %v3598_v23 }
 0x3a1   : > { %v2239_v8 = vpop.f32.mrf.mxu1 }
 0x3a2   : > { %2278 = vst [vmem:[#allocation2 + $0x10] sm:$0xff] %v2270_v48  ;;  %v2268_v50 = vadd.f32 %v2239_v8, %v3588_v18 }
 0x3a4   : > { %2276 = vst [vmem:[#allocation2] sm:$0xff] %v2268_v50 }
 0x3ac   : > { %v3173_v46 = vpop.f32.mrf.mxu1 }
 0x3ad   : > { %v2273_v13 = vadd.f32 %v3173_v46, %v3610_v29 }
 0x3ae   : > { %v2252_v63 = vpop.f32.mrf.mxu1 }
 0x3af   : > { %2281 = vst [vmem:[#allocation2 + $0x28] sm:$0xff] %v2273_v13  ;;  %v2271_v22 = vadd.f32 %v2252_v63, %v3606_v27 }
 0x3b0   : > { %v3174_v0 = vpop.f32.mrf.mxu1 }
 0x3b1   : > { %2279 = vst [vmem:[#allocation2 + $0x8] sm:$0xff] %v2271_v22  ;;  %v2274_v17 = vadd.f32 %v3174_v0, %v3616_v34  ;;  %2286 = sbr.rel (%p2939_p0) target bundleno = 1716 (0x6b4), region = 96 }
 0x3b2   : > { %v2255_v6 = vpop.f32.mrf.mxu1 }
 0x3b3   : > { %2282 = vst [vmem:[#allocation2 + $0x38] sm:$0xff] %v2274_v17  ;;  %v2272_v23 = vadd.f32 %v2255_v6, %v3608_v28 }
 0x3b5   : > { %2280 = vst [vmem:[#allocation2 + $0x20] sm:$0xff] %v2272_v23 }
 0x3b6   : > { %v3330_v18 = vld [vmem:[%s4070_s11 + $0x38] sm:$0xff]   ;;  %v3331_v27 = vld [vmem:[%s4070_s11 + $0x30] sm:$0xff]   ;;  %v3332_v29 = vld [vmem:[%s4070_s11 + $0x28] sm:$0xff]   ;;  %v2583_v13 = vlaneseq }
 0x3b7   : > { %3175 = vmatprep.subr.bf16.mxu0 %v3330_v18  ;;  %v3333_v28 = vld [vmem:[%s4070_s11 + $0x20] sm:$0xff]   ;;  %v2287_v34 = vld [vmem:[#allocation2 + $0x30] sm:$0xff]  ;;  %v3334_v10 = vld [vmem:[%s4070_s11 + $0x18] sm:$0xff]  }
 0x3b8   : > { %3176 = vmatpush3.bf16.msra.mxu0 %v3330_v18  ;;  %v2288_v7 = vld [vmem:[#allocation2] sm:$0xff]  ;;  %v3338_v12 = vld [vmem:[%s4101_s12 + $0x38] sm:$0xff]   ;;  %v3339_v56 = vld [vmem:[%s4101_s12 + $0x30] sm:$0xff]   ;;  %v2584_v63 = vand.u32 127, %v2583_v13 }
 0x3b9   : > { %3177 = vmatprep.subr.bf16.mxu0 %v3331_v27  ;;  %v2311_v9 = vpack.c.bf16 %v2288_v7, %v2287_v34  ;;  %3199 = vmatprep.subr.bf16.mxu1 %v3338_v12  ;;  %v3335_v62 = vld [vmem:[%s4070_s11 + $0x10] sm:$0xff]   ;;  %v3340_v60 = vld [vmem:[%s4101_s12 + $0x28] sm:$0xff]   ;;  %v3341_v14 = vld [vmem:[%s4101_s12 + $0x20] sm:$0xff]  }
 0x3ba   : > { %3200 = vmatpush3.bf16.msra.mxu1 %v3338_v12  ;;  %v3336_v51 = vld [vmem:[%s4070_s11 + $0x8] sm:$0xff]   ;;  %v3342_v11 = vld [vmem:[%s4101_s12 + $0x18] sm:$0xff]   ;;  %v3337_v15 = vld [vmem:[%s4070_s11] sm:$0xff]   ;;  %vm2585_vm15 = vcmp.lt.s32.totalorder %v2584_v63, 10 }
 0x3bb   : > { %3191 = vmatprep.mubr.bf16.mxu0 %v2311_v9  ;;  %3201 = vmatprep.subr.bf16.mxu1 %v3339_v56  ;;  %v2289_v16 = vld [vmem:[#allocation2 + $0x18] sm:$0xff]  ;;  %v2290_v19 = vld [vmem:[#allocation2 + $0x10] sm:$0xff]  ;;  %v2291_v20 = vld [vmem:[#allocation2 + $0x8] sm:$0xff] }
 0x3bc   : > { %3178 = vmatpush3.bf16.msra.mxu0 %v3331_v27  ;;  %v2292_v21 = vld [vmem:[#allocation2 + $0x20] sm:$0xff]  ;;  %v2312_v24 = vpack.c.bf16 %v2290_v19, %v2289_v16  ;;  %v2293_v31 = vld [vmem:[#allocation2 + $0x28] sm:$0xff]  ;;  %v2294_v58 = vld [vmem:[#allocation2 + $0x38] sm:$0xff] }
 0x3bd   : > { %3179 = vmatprep.subr.bf16.mxu0 %v3332_v29  ;;  %v2313_v30 = vpack.c.bf16 %v2292_v21, %v2291_v20  ;;  %v2314_v32 = vpack.c.bf16 %v2294_v58, %v2293_v31  ;;  %v3343_v2 = vld [vmem:[%s4101_s12 + $0x10] sm:$0xff]   ;;  %v3344_v1 = vld [vmem:[%s4101_s12 + $0x8] sm:$0xff]   ;;  %v3345_v25 = vld [vmem:[%s4101_s12] sm:$0xff]  }
 0x3be   : > { %3202 = vmatpush3.bf16.msra.mxu1 %v3339_v56  ;;  %v2940_v39 = vld [vmem:[%s4102_s29] ss:$0 sm:$0xff] }
 0x3bf   : > { %3203 = vmatprep.subr.bf16.mxu1 %v3340_v60  ;;  %v2949_v22 = vld [vmem:[%s4103_s15] ss:$0 sm:$0xff] }
 0x3c0   : > { %3180 = vmatpush3.bf16.msra.mxu0 %v3332_v29 }
 0x3c1   : > { %3181 = vmatprep.subr.bf16.mxu0 %v3333_v28 }
 0x3c2   : > { %3204 = vmatpush3.bf16.msra.mxu1 %v3340_v60 }
 0x3c3   : > { %3205 = vmatprep.subr.bf16.mxu1 %v3341_v14 }
 0x3c4   : > { %3182 = vmatpush3.bf16.msra.mxu0 %v3333_v28 }
 0x3c5   : > { %3183 = vmatprep.subr.bf16.mxu0 %v3334_v10 }
 0x3c6   : > { %3206 = vmatpush3.bf16.msra.mxu1 %v3341_v14 }
 0x3c7   : > { %3207 = vmatprep.subr.bf16.mxu1 %v3342_v11 }
 0x3c8   : > { %3184 = vmatpush3.bf16.msra.mxu0 %v3334_v10 }
 0x3c9   : > { %3185 = vmatprep.subr.bf16.mxu0 %v3335_v62 }
 0x3ca   : > { %3208 = vmatpush3.bf16.msra.mxu1 %v3342_v11 }
 0x3cb   : > { %3209 = vmatprep.subr.bf16.mxu1 %v3343_v2 }
 0x3cc   : > { %3186 = vmatpush3.bf16.msra.mxu0 %v3335_v62 }
 0x3cd   : > { %3187 = vmatprep.subr.bf16.mxu0 %v3336_v51 }
 0x3ce   : > { %3210 = vmatpush3.bf16.msra.mxu1 %v3343_v2 }
 0x3cf   : > { %3211 = vmatprep.subr.bf16.mxu1 %v3344_v1 }
 0x3d0   : > { %3188 = vmatpush3.bf16.msra.mxu0 %v3336_v51 }
 0x3d1   : > { %3189 = vmatprep.subr.bf16.mxu0 %v3337_v15 }
 0x3d2   : > { %3212 = vmatpush3.bf16.msra.mxu1 %v3344_v1 }
 0x3d3   : > { %3213 = vmatprep.subr.bf16.mxu1 %v3345_v25 }
 0x3d4   : > { %3190 = vmatpush3.bf16.msra.mxu0 %v3337_v15 }
 0x3d6   : > { %3214 = vmatpush3.bf16.msra.mxu1 %v3345_v25 }
 0x3d7   : > { %3192 = vmatmul.mubr.bf16.vlgmr.msra.gmra.mxu0 %v2312_v24 }
 0x3d8   : > { %3195 = vmatprep.mubr.bf16.mxu0 %v2313_v30 }
 0x3df   : > { %3196 = vmatmul.mubr.bf16.gmra.mxu0 %v2314_v32 }
 0x497   : > { %v3193_v35 = vpop.f32.mrf.mxu0 }
 0x498   : > { %v2413_v44 = vadd.f32 %v3193_v35, %v2940_v39 }
 0x499   : > { %v2404_v38 = vpop.f32.mrf.mxu0 }
 0x49a   : > { %v2405_v41 = vadd.f32 %v2940_v39, %v2404_v38  ;;  %v2437_v3 = vmax.f32 %v2413_v44, 0.0 }
 0x49b   : > { %v3194_v40 = vpop.f32.mrf.mxu0 }
 0x49c   : > { %v2416_v42 = vadd.f32 %v3194_v40, %v2940_v39  ;;  %v2435_v47 = vmax.f32 %v2405_v41, 0.0 }
 0x49d   : > { %v2407_v26 = vpop.f32.mrf.mxu0 }
 0x49e   : > { %v2408_v45 = vadd.f32 %v2940_v39, %v2407_v26  ;;  %v2438_v37 = vmax.f32 %v2416_v42, 0.0 }
 0x49f   : > { %v3197_v36 = vpop.f32.mrf.mxu0 }
 0x4a0   : > { %v2436_v49 = vmax.f32 %v2408_v45, 0.0  ;;  %v2460_v52 = vpack.c.bf16 %v2438_v37, %v2437_v3  ;;  %v2429_v59 = vadd.f32 %v3197_v36, %v2940_v39 }
 0x4a1   : > { %v2420_v33 = vpop.f32.mrf.mxu0 }
 0x4a2   : > { %v2459_v43 = vpack.c.bf16 %v2436_v49, %v2435_v47  ;;  %v2421_v54 = vadd.f32 %v2940_v39, %v2420_v33  ;;  %v2441_v8 = vmax.f32 %v2429_v59, 0.0 }
 0x4a3   : > { %v3198_v53 = vpop.f32.mrf.mxu0 }
 0x4a4   : > { %v2432_v55 = vadd.f32 %v3198_v53, %v2940_v39  ;;  %3215 = vmatprep.mubr.bf16.mxu1 %v2459_v43  ;;  %v2439_v5 = vmax.f32 %v2421_v54, 0.0 }
 0x4a5   : > { %v2423_v57 = vpop.f32.mrf.mxu0  ;;  %3216 = vmatmul.mubr.bf16.vlgmr.msra.gmra.mxu1 %v2460_v52 }
 0x4a6   : > { %v2424_v61 = vadd.f32 %v2940_v39, %v2423_v57  ;;  %v2442_v4 = vmax.f32 %v2432_v55, 0.0 }
 0x4a8   : > { %v2440_v48 = vmax.f32 %v2424_v61, 0.0  ;;  %v2462_v46 = vpack.c.bf16 %v2442_v4, %v2441_v8 }
 0x4aa   : > { %v2461_v50 = vpack.c.bf16 %v2440_v48, %v2439_v5 }
 0x4ac   : > { %3219 = vmatprep.mubr.bf16.mxu1 %v2461_v50 }
 0x4ad   : > { %3220 = vmatmul.mubr.bf16.gmra.mxu1 %v2462_v46 }
 0x565   : > { %v3217_v0 = vpop.f32.mrf.mxu1 }
 0x566   : > { %v2561_v17 = vadd.f32 %v3217_v0, %v2949_v22 }
 0x567   : > { %v2552_v6 = vpop.f32.mrf.mxu1 }
 0x568   : > { %v2553_v23 = vadd.f32 %v2949_v22, %v2552_v6  ;;  %v2588_v18 = vsel %vm2585_vm15, %v2561_v17, -1e+30 }
 0x569   : > { %2598 = vmax.xlane.f32.xlu1 %v2588_v18  ;;  %v3218_v27 = vpop.f32.mrf.mxu1 }
 0x56a   : > { %v2564_v29 = vadd.f32 %v3218_v27, %v2949_v22  ;;  %v2586_v28 = vsel %vm2585_vm15, %v2553_v23, -1e+30 }
 0x56b   : > { %v2555_v34 = vpop.f32.mrf.mxu1  ;;  %2594 = vmax.xlane.f32.xlu0 %v2586_v28 }
 0x56c   : > { %v2556_v7 = vadd.f32 %v2949_v22, %v2555_v34  ;;  %v2589_v9 = vsel %vm2585_vm15, %v2564_v29, -1e+30 }
 0x56d   : > { %2600 = vmax.xlane.f32.xlu1 %v2589_v9  ;;  %v3221_v10 = vpop.f32.mrf.mxu1 }
 0x56e   : > { %v2587_v12 = vsel %vm2585_vm15, %v2556_v7, -1e+30  ;;  %v2577_v14 = vadd.f32 %v3221_v10, %v2949_v22 }
 0x56f   : > { %v2568_v56 = vpop.f32.mrf.mxu1  ;;  %2596 = vmax.xlane.f32.xlu0 %v2587_v12 }
 0x570   : > { %v2569_v62 = vadd.f32 %v2949_v22, %v2568_v56  ;;  %v2592_v20 = vsel %vm2585_vm15, %v2577_v14, -1e+30 }
 0x571   : > { %v3222_v60 = vpop.f32.mrf.mxu1 }
 0x572   : > { %v2590_v51 = vsel %vm2585_vm15, %v2569_v62, -1e+30  ;;  %v2580_v16 = vadd.f32 %v3222_v60, %v2949_v22 }
 0x573   : > { %v2571_v11 = vpop.f32.mrf.mxu1  ;;  %2602 = vmax.xlane.f32.xlu0 %v2590_v51 }
 0x574   : > { %v2572_v15 = vadd.f32 %v2949_v22, %v2571_v11  ;;  %v2593_v21 = vsel %vm2585_vm15, %v2580_v16, -1e+30 }
 0x576   : > { %v2591_v19 = vsel %vm2585_vm15, %v2572_v15, -1e+30 }
 0x577   : > { %2604 = vmax.xlane.f32.xlu1 %v2591_v19  ;;  %2606 = vmax.xlane.f32.xlu0 %v2592_v20 }
 0x57b   : > { %2608 = vmax.xlane.f32.xlu1 %v2593_v21 }
 0x5f2   : > { %v2599_v24 = vpop.xlane.xlu1 %2598 }
 0x5f3   : > { %v3994_v30 = vsub.f32 %v2588_v18, %v2599_v24 }
 0x5f4   : > { %v2595_v31 = vpop.xlane.xlu0 %2594 }
 0x5f5   : > { %v2622_v58 = vmul.f32 1.442695, %v3994_v30  ;;  %v3997_v32 = vsub.f32 %v2586_v28, %v2595_v31 }
 0x5f6   : > { %v2601_v2 = vpop.xlane.xlu1 %2600 }
 0x5f7   : > { %3346 = vpow2.f32 %v2622_v58  ;;  %v2618_v1 = vmul.f32 1.442695, %v3997_v32  ;;  %v4000_v25 = vsub.f32 %v2589_v9, %v2601_v2 }
 0x5f8   : > { %v2597_v35 = vpop.xlane.xlu0 %2596 }
 0x5f9   : > { %v2624_v38 = vmul.f32 1.442695, %v4000_v25  ;;  %v4003_v39 = vsub.f32 %v2587_v12, %v2597_v35  ;;  %3348 = vpow2.f32 %v2618_v1 }
 0x5fb   : > { %3350 = vpow2.f32 %v2624_v38  ;;  %v2620_v40 = vmul.f32 1.442695, %v4003_v39 }
 0x5fc   : > { %v2603_v41 = vpop.xlane.xlu0 %2602 }
 0x5fd   : > { %v4006_v42 = vsub.f32 %v2590_v51, %v2603_v41  ;;  %3352 = vpow2.f32 %v2620_v40 }
 0x5ff   : > { %v2626_v44 = vmul.f32 1.442695, %v4006_v42 }
 0x600   : > { %v2605_v26 = vpop.xlane.xlu1 %2604  ;;  %v2607_v45 = vpop.xlane.xlu0 %2606 }
 0x601   : > { %3354 = vpow2.f32 %v2626_v44  ;;  %v4009_v37 = vsub.f32 %v2591_v19, %v2605_v26  ;;  %v4011_v36 = vsub.f32 %v2592_v20, %v2607_v45 }
 0x603   : > { %v2628_v47 = vmul.f32 1.442695, %v4009_v37  ;;  %v2630_v49 = vmul.f32 1.442695, %v4011_v36 }
 0x604   : > { %v3347_v3 = vpop.eup %3346  ;;  %v2609_v33 = vpop.xlane.xlu1 %2608 }
 0x605   : > { %3356 = vpow2.f32 %v2628_v47  ;;  %v4015_v43 = vsub.f32 %v2593_v21, %v2609_v33  ;;  %2638 = vadd.xlane.f32.xlu0 %v3347_v3 }
 0x606   : > { %3358 = vpow2.f32 %v2630_v49  ;;  %v3349_v52 = vpop.eup %3348 }
 0x607   : > { %v2632_v53 = vmul.f32 1.442695, %v4015_v43 }
 0x608   : > { %v3351_v54 = vpop.eup %3350 }
 0x609   : > { %3360 = vpow2.f32 %v2632_v53  ;;  %2640 = vadd.xlane.f32.xlu1 %v3351_v54  ;;  %2634 = vadd.xlane.f32.xlu0 %v3349_v52 }
 0x60a   : > { %v3353_v55 = vpop.eup %3352 }
 0x60d   : > { %2636 = vadd.xlane.f32.xlu1 %v3353_v55 }
 0x60e   : > { %v3355_v59 = vpop.eup %3354 }
 0x60f   : > { %2642 = vadd.xlane.f32.xlu0 %v3355_v59 }
 0x612   : > { %v3357_v57 = vpop.eup %3356 }
 0x613   : > { %v3359_v61 = vpop.eup %3358  ;;  %2644 = vadd.xlane.f32.xlu1 %v3357_v57 }
 0x614   : > { %2646 = vadd.xlane.f32.xlu0 %v3359_v61 }
 0x616   : > { %v3361_v4 = vpop.eup %3360 }
 0x617   : > { %2648 = vadd.xlane.f32.xlu1 %v3361_v4 }
 0x68e   : > { %v2639_v5 = vpop.xlane.xlu0 %2638 }
 0x68f   : > { %3362 = vlog2.f32 %v2639_v5 }
 0x692   : > { %v2641_v48 = vpop.xlane.xlu1 %2640  ;;  %v2635_v8 = vpop.xlane.xlu0 %2634 }
 0x693   : > { %3364 = vlog2.f32 %v2641_v48 }
 0x694   : > { %3366 = vlog2.f32 %v2635_v8 }
 0x696   : > { %v2637_v50 = vpop.xlane.xlu1 %2636 }
 0x697   : > { %3368 = vlog2.f32 %v2637_v50 }
 0x698   : > { %v2643_v46 = vpop.xlane.xlu0 %2642 }
 0x699   : > { %3370 = vlog2.f32 %v2643_v46 }
 0x69c   : > { %v3363_v13 = vpop.eup %3362  ;;  %v2645_v63 = vpop.xlane.xlu1 %2644 }
 0x69d   : > { %v2655_v22 = vmul.f32 0.6931472, %v3363_v13  ;;  %3372 = vlog2.f32 %v2645_v63  ;;  %v2647_v0 = vpop.xlane.xlu0 %2646 }
 0x69e   : > { %3374 = vlog2.f32 %v2647_v0 }
 0x69f   : > { %v2668_v17 = vsub.f32 %v3994_v30, %v2655_v22 }
 0x6a0   : > { %v3365_v6 = vpop.eup %3364  ;;  %v2649_v23 = vpop.xlane.xlu1 %2648 }
 0x6a1   : > { %v3367_v18 = vpop.eup %3366  ;;  %2676 = vst [vmem:[%s4104_s13 + $0x10] sm:$0xff] %v2668_v17  ;;  %v2657_v27 = vmul.f32 0.6931472, %v3365_v6  ;;  %3376 = vlog2.f32 %v2649_v23 }
 0x6a2   : > { %v2651_v29 = vmul.f32 0.6931472, %v3367_v18 }
 0x6a3   : > { %v2669_v28 = vsub.f32 %v4000_v25, %v2657_v27 }
 0x6a4   : > { %v3369_v34 = vpop.eup %3368  ;;  %v2666_v7 = vsub.f32 %v3997_v32, %v2651_v29 }
 0x6a5   : > { %2677 = vst [vmem:[%s4104_s13 + $0x18] sm:$0xff] %v2669_v28  ;;  %v2653_v9 = vmul.f32 0.6931472, %v3369_v34 }
 0x6a6   : > { %v3371_v10 = vpop.eup %3370  ;;  %2674 = vst [vmem:[%s4104_s13] sm:$0xff] %v2666_v7 }
 0x6a7   : > { %v2667_v12 = vsub.f32 %v4003_v39, %v2653_v9  ;;  %v2659_v56 = vmul.f32 0.6931472, %v3371_v10 }
 0x6a9   : > { %2675 = vst [vmem:[%s4104_s13 + $0x8] sm:$0xff] %v2667_v12  ;;  %v2670_v62 = vsub.f32 %v4006_v42, %v2659_v56 }
 0x6aa   : > { %v3373_v60 = vpop.eup %3372 }
 0x6ab   : > { %v3375_v14 = vpop.eup %3374  ;;  %2678 = vst [vmem:[%s4104_s13 + $0x20] sm:$0xff] %v2670_v62  ;;  %v2661_v51 = vmul.f32 0.6931472, %v3373_v60 }
 0x6ac   : > { %v2663_v11 = vmul.f32 0.6931472, %v3375_v14 }
 0x6ad   : > { %v2671_v15 = vsub.f32 %v4009_v37, %v2661_v51 }
 0x6ae   : > { %v3377_v16 = vpop.eup %3376  ;;  %v2672_v19 = vsub.f32 %v4011_v36, %v2663_v11 }
 0x6af   : > { %2679 = vst [vmem:[%s4104_s13 + $0x28] sm:$0xff] %v2671_v15  ;;  %v2665_v20 = vmul.f32 0.6931472, %v3377_v16 }
 0x6b0   : > { %2680 = vst [vmem:[%s4104_s13 + $0x30] sm:$0xff] %v2672_v19 }
 0x6b1   : > { %v2673_v21 = vsub.f32 %v4015_v43, %v2665_v20 }
 0x6b3   : > { %2681 = vst [vmem:[%s4104_s13 + $0x38] sm:$0xff] %v2673_v21 }
 0x6b4 PF: > { %s4105_s17 = sld [smem:[#allocation9_spill]] }
 0x6b5   : > { %s4106_s23 = sld [smem:[#allocation8_spill]] }
 0x6b6   : > { %s4107_s24 = sld [smem:[#allocation10_spill]] }
 0x6ba   : > { %s31_s25 = sadd.s32 1, %s4105_s17  }
 0x6bb   : > { %p28_p1 = scmp.ge.s32.totalorder %s31_s25, 8  }
 0x6bd   :  { %30 = sbr.rel (!%p28_p1) target bundleno = 19 (0x13), region = 153 }

</bundles_post_ra>
